<compile_context>
chip_gen: v5e
topology: v5e:2x2
jax: 0.10.0
libtpu: 0.0.40
codegen_flags: <defaults>
</compile_context>

<pallas_src>
import functools

import jax
import jax.numpy as jnp
from jax.experimental import pallas as pl
from jax.experimental.pallas import tpu as pltpu

LANE = 128  # all channel dims (in=16, hidden=32, out=8) are zero-padded to one full lane width


# ----------------------------- fused Pallas kernel -----------------------------

def fused_gcn_kernel(a_ref, p_ref, x_ref, w1_ref, b1_ref, w2_ref, b2_ref, o_ref,
                     acc_ref, pooled_ref, h_a, h_b, *, out_channels, tm, tk):
    l = pl.program_id(0)          # layer index                      (arbitrary)
    i = pl.program_id(1)          # output row tile of A'            (arbitrary: h carried in scratch)
    k = pl.program_id(2)          # K-reduction tile of A'           (arbitrary, last)
    nl = pl.num_programs(0)
    ni = pl.num_programs(1)
    nk = pl.num_programs(2)

    # One-time init at the very first grid step.
    @pl.when((l == 0) & (i == 0) & (k == 0))
    def _():
        h_a[...] = x_ref[...]                       # layer 0 reads node features from h_a
        h_b[...] = jnp.zeros_like(h_b)
        pooled_ref[...] = jnp.zeros_like(pooled_ref)
        o_ref[...] = jnp.zeros_like(o_ref)

    # Reset the f32 aggregation accumulator at the start of every (layer, row-tile) reduction.
    @pl.when(k == 0)
    def _():
        acc_ref[...] = jnp.zeros_like(acc_ref)

    # Partial GIN aggregation: acc[i-th row tile] += A'[i, k] @ h_prev[k-th row tile].
    ks = pl.multiple_of(k * tk, 128)
    hp_a = h_a[pl.ds(ks, tk), :]
    hp_b = h_b[pl.ds(ks, tk), :]
    h_prev = jnp.where(l % 2 == 0, hp_a, hp_b)      # ping-pong read (bf16)
    acc_ref[...] += jnp.dot(a_ref[...], h_prev, preferred_element_type=jnp.float32)

    # End of the K reduction for this row tile: apply the layer MLP (BN folded into Linear1).
    @pl.when(k == nk - 1)
    def _():
        w1 = w1_ref[l]            # (128, 128) bf16, resident in VMEM for the whole grid
        b1 = b1_ref[l]            # (1, 128)   f32
        w2 = w2_ref[l]
        b2 = b2_ref[l]
        agg = acc_ref[...].astype(jnp.bfloat16)
        z = jnp.dot(agg, w1, preferred_element_type=jnp.float32) + b1   # Linear1 (+ folded BN)
        z = jnp.maximum(z, 0.0)                                         # MLP ReLU
        z = jnp.dot(z.astype(jnp.bfloat16), w2,
                    preferred_element_type=jnp.float32) + b2            # Linear2 (plain_last)
        h_new = jnp.maximum(z, 0.0).astype(jnp.bfloat16)                # outer .relu(), (tm, 128)

        rs = pl.multiple_of(i * tm, 128)

        @pl.when(l % 2 == 0)
        def _():
            h_b[pl.ds(rs, tm), :] = h_new

        @pl.when(l % 2 == 1)
        def _():
            h_a[pl.ds(rs, tm), :] = h_new

        # Last layer: accumulate global_add_pool per row tile, then softmax once at the end.
        @pl.when(l == nl - 1)
        def _():
            pooled_ref[...] += jnp.dot(p_ref[...], h_new,
                                       preferred_element_type=jnp.float32)

            @pl.when(i == ni - 1)
            def _():
                pooled = pooled_ref[...]                                  # (g_pad, 128) f32
                col = jax.lax.broadcasted_iota(jnp.int32, pooled.shape, 1)
                pooled = jnp.where(col < out_channels, pooled, -1e30)     # mask padded lanes
                m = jnp.max(pooled, axis=1, keepdims=True)
                e = jnp.exp(pooled - m)
                o_ref[...] = e / jnp.sum(e, axis=1, keepdims=True)        # exact normalization


# ----------------------------- wrapper -----------------------------------------

def _round_up(v, m):
    return ((v + m - 1) // m) * m


def gcn_forward(x, edge_index, batch, padded_params, num_graphs, out_channels,
                *, tm=128, tk=128):
    n, c_in = x.shape
    num_layers = len(padded_params)

    n_pad = _round_up(max(n, tm, tk), max(tm, tk))
    assert n_pad % tm == 0 and n_pad % tk == 0
    g_pad = _round_up(max(num_graphs, 8), 8)

    # Dense GIN aggregation operator with the self term folded in: A'[dst, src] = #edges + I (bf16 exact).
    a = jnp.zeros((n_pad, n_pad), jnp.float32)
    a = a.at[edge_index[1], edge_index[0]].add(1.0)
    a = a.at[jnp.arange(n), jnp.arange(n)].add(1.0)
    a = a.astype(jnp.bfloat16)

    # Pooling indicator matrix (g_pad, n_pad); padded node columns match no graph.
    batch_pad = jnp.full((n_pad,), -1, jnp.int32).at[:n].set(batch)
    p = (batch_pad[None, :] == jnp.arange(g_pad, dtype=jnp.int32)[:, None]).astype(jnp.bfloat16)

    # Lane-padded node features.
    x_p = jnp.zeros((n_pad, LANE), jnp.float32).at[:n, :c_in].set(x).astype(jnp.bfloat16)

    # Stacked per-layer (padded, BN-folded) weights: bf16 weights, f32 biases.
    w1s = jnp.stack([pp[0] for pp in padded_params]).astype(jnp.bfloat16)   # (L, 128, 128)
    b1s = jnp.stack([pp[1] for pp in padded_params])                        # (L, 1, 128) f32
    w2s = jnp.stack([pp[2] for pp in padded_params]).astype(jnp.bfloat16)
    b2s = jnp.stack([pp[3] for pp in padded_params])

    ni = n_pad // tm
    nk = n_pad // tk
    kernel = functools.partial(fused_gcn_kernel, out_channels=out_channels, tm=tm, tk=tk)

    grid_spec = pltpu.PrefetchScalarGridSpec(
        num_scalar_prefetch=0,
        grid=(num_layers, ni, nk),
        in_specs=[
            pl.BlockSpec((tm, tk), lambda l, i, k: (i, k)),                      # A' tiles (streamed)
            pl.BlockSpec((g_pad, tm), lambda l, i, k: (0, i)),                   # pool cols per row tile
            pl.BlockSpec((n_pad, LANE), lambda l, i, k: (0, 0)),                 # node features (resident)
            pl.BlockSpec((num_layers, LANE, LANE), lambda l, i, k: (0, 0, 0)),   # w1 stack (resident)
            pl.BlockSpec((num_layers, 1, LANE), lambda l, i, k: (0, 0, 0)),      # b1 stack (resident)
            pl.BlockSpec((num_layers, LANE, LANE), lambda l, i, k: (0, 0, 0)),   # w2 stack (resident)
            pl.BlockSpec((num_layers, 1, LANE), lambda l, i, k: (0, 0, 0)),      # b2 stack (resident)
        ],
        out_specs=pl.BlockSpec((g_pad, LANE), lambda l, i, k: (0, 0)),
        scratch_shapes=[
            pltpu.VMEM((tm, LANE), jnp.float32),       # aggregation accumulator
            pltpu.VMEM((g_pad, LANE), jnp.float32),    # pooled accumulator
            pltpu.VMEM((n_pad, LANE), jnp.bfloat16),   # h ping
            pltpu.VMEM((n_pad, LANE), jnp.bfloat16),   # h pong
        ],
    )

    out_padded = pl.pallas_call(
        kernel,
        out_shape=jax.ShapeDtypeStruct((g_pad, LANE), jnp.float32),
        grid_spec=grid_spec,
        compiler_params=pltpu.CompilerParams(
            dimension_semantics=("arbitrary", "arbitrary", "arbitrary"),
            vmem_limit_bytes=64 * 1024 * 1024,
        ),
    )(a, p, x_p, w1s, b1s, w2s, b2s)
    return out_padded[:num_graphs, :out_channels]


# ----------------------------- parameter init ----------------------------------

def init_gin_layer(key, c_in, c_hidden, c_out):
    """Returns (padded params for the kernel, raw folded params for the JAX reference)."""
    k1w, k1b, k2w, k2b = jax.random.split(key, 4)
    # PyTorch nn.Linear default init: U(-1/sqrt(fan_in), 1/sqrt(fan_in)).
    bound1 = 1.0 / (c_in ** 0.5)
    w1 = jax.random.uniform(k1w, (c_in, c_hidden), jnp.float32, -bound1, bound1)
    b1 = jax.random.uniform(k1b, (c_hidden,), jnp.float32, -bound1, bound1)
    bound2 = 1.0 / (c_hidden ** 0.5)
    w2 = jax.random.uniform(k2w, (c_hidden, c_out), jnp.float32, -bound2, bound2)
    b2 = jax.random.uniform(k2b, (c_out,), jnp.float32, -bound2, bound2)

    # BatchNorm1d eval-mode fold (fresh-init stats: gamma=1, beta=0, mean=0, var=1, eps=1e-5)
    # folded into Linear1.  Dropout(p=0.5) is identity in eval mode.
    bn_eps = 1e-5
    scale = 1.0 / jnp.sqrt(1.0 + bn_eps)
    w1f = w1 * scale
    b1f = b1 * scale

    # Zero-pad to 128 lanes (exact: padded cols stay 0 through ReLU and the next matmul).
    W1 = jnp.zeros((LANE, LANE), jnp.float32).at[:c_in, :c_hidden].set(w1f)
    B1 = jnp.zeros((1, LANE), jnp.float32).at[0, :c_hidden].set(b1f)
    W2 = jnp.zeros((LANE, LANE), jnp.float32).at[:c_hidden, :c_out].set(w2)
    B2 = jnp.zeros((1, LANE), jnp.float32).at[0, :c_out].set(b2)
    return (W1, B1, W2, B2), (w1f, b1f, w2, b2)


# ----------------------------- pure-JAX reference -------------------------------
# Mirrors the kernel's numeric path (bf16 MXU operands, f32 accumulation / biases / softmax).

def gcn_reference(x, edge_index, batch, raw_params, num_graphs):
    n = x.shape[0]
    a = jnp.zeros((n, n), jnp.float32).at[edge_index[1], edge_index[0]].add(1.0)
    a = (a + jnp.eye(n, dtype=jnp.float32)).astype(jnp.bfloat16)
    p = (batch[None, :] == jnp.arange(num_graphs)[:, None]).astype(jnp.bfloat16)
    h = x.astype(jnp.bfloat16)
    for (w1, b1, w2, b2) in raw_params:
        agg = jnp.dot(a, h, preferred_element_type=jnp.float32)
        z = jnp.dot(agg.astype(jnp.bfloat16), w1.astype(jnp.bfloat16),
                    preferred_element_type=jnp.float32) + b1
        z = jnp.maximum(z, 0.0)
        z = jnp.dot(z.astype(jnp.bfloat16), w2.astype(jnp.bfloat16),
                    preferred_element_type=jnp.float32) + b2
        h = jnp.maximum(z, 0.0).astype(jnp.bfloat16)
    pooled = jnp.dot(p, h, preferred_element_type=jnp.float32)
    return jax.nn.softmax(pooled, axis=1)


# ----------------------------- main ---------------------------------------------

if __name__ == "__main__":
    key = jax.random.PRNGKey(0)
    N, E, G = 200, 800, 4                      # nodes, edges, graphs (N pads to 256 -> 2x2 A tiles)
    in_channels, hidden_channels, out_channels = 16, 32, 8

    k_x, k_e, k_b, k_p = jax.random.split(key, 4)
    x = jax.random.normal(k_x, (N, in_channels), jnp.float32)
    edge_index = jax.random.randint(k_e, (2, E), 0, N, jnp.int32)
    batch = jnp.sort(jax.random.randint(k_b, (N,), 0, G, jnp.int32))

    layer_dims = [
        (in_channels, hidden_channels, hidden_channels),
        (hidden_channels, hidden_channels, hidden_channels),
        (hidden_channels, hidden_channels, hidden_channels),
        (hidden_channels, hidden_channels, hidden_channels),
        (hidden_channels, hidden_channels, out_channels),
    ]
    param_keys = jax.random.split(k_p, len(layer_dims))
    inits = [init_gin_layer(k, *dims) for k, dims in zip(param_keys, layer_dims)]
    padded_params = [pi[0] for pi in inits]
    raw_params = [pi[1] for pi in inits]

    out = gcn_forward(x, edge_index, batch, padded_params, G, out_channels)
    out = jax.block_until_ready(out)

    assert out.shape == (G, out_channels)
    # softmax rows must sum to 1 (exact divide in-kernel)
    assert bool(jnp.allclose(jnp.sum(out, axis=1), 1.0, atol=1e-3))
    # match the pure-JAX reference of the same (bf16-operand, f32-accumulate) forward pass
    ref = gcn_reference(x, edge_index, batch, raw_params, G)
    assert bool(jnp.allclose(out, ref, rtol=2e-2, atol=5e-3))
    print("KERNEL_OK")
</pallas_src>

<mosaic_0001>
module attributes {stable_mosaic.version = 11 : i64} {
  func.func @fused_gcn_kernel(%arg0: i32, %arg1: i32, %arg2: i32, %arg3: memref<128x128xbf16, #tpu.memory_space<vmem>>, %arg4: memref<8x128xbf16, #tpu.memory_space<vmem>>, %arg5: memref<256x128xbf16, #tpu.memory_space<vmem>>, %arg6: memref<5x128x128xbf16, #tpu.memory_space<vmem>>, %arg7: memref<5x1x128xf32, #tpu.memory_space<vmem>>, %arg8: memref<5x128x128xbf16, #tpu.memory_space<vmem>>, %arg9: memref<5x1x128xf32, #tpu.memory_space<vmem>>, %arg10: memref<8x128xf32, #tpu.memory_space<vmem>>, %arg11: memref<128x128xf32, #tpu.memory_space<vmem>>, %arg12: memref<8x128xf32, #tpu.memory_space<vmem>>, %arg13: memref<256x128xbf16, #tpu.memory_space<vmem>>, %arg14: memref<256x128xbf16, #tpu.memory_space<vmem>>) attributes {dimension_semantics = [#tpu.dimension_semantics<arbitrary>, #tpu.dimension_semantics<arbitrary>, #tpu.dimension_semantics<arbitrary>], iteration_bounds = array<i64: 5, 2, 2>, scalar_prefetch = 0 : i64, scratch_operands = 4 : i64, tpu.core_type = #tpu.core_type<tc>, window_params = [{transform_indices = @transform_0, window_bounds = array<i64: 128, 128>}, {transform_indices = @transform_1, window_bounds = array<i64: 8, 128>}, {pipeline_mode = #tpu.pipeline_mode<synchronous>, transform_indices = @transform_2, window_bounds = array<i64: 256, 128>}, {pipeline_mode = #tpu.pipeline_mode<synchronous>, transform_indices = @transform_3, window_bounds = array<i64: 5, 128, 128>}, {pipeline_mode = #tpu.pipeline_mode<synchronous>, transform_indices = @transform_4, window_bounds = array<i64: 5, 1, 128>}, {pipeline_mode = #tpu.pipeline_mode<synchronous>, transform_indices = @transform_5, window_bounds = array<i64: 5, 128, 128>}, {pipeline_mode = #tpu.pipeline_mode<synchronous>, transform_indices = @transform_6, window_bounds = array<i64: 5, 1, 128>}, {pipeline_mode = #tpu.pipeline_mode<synchronous>, transform_indices = @transform_7, window_bounds = array<i64: 8, 128>}]} {
    %c0_i32 = arith.constant 0 : i32
    %0 = arith.cmpi eq, %arg0, %c0_i32 : i32
    %c0_i32_0 = arith.constant 0 : i32
    %1 = arith.cmpi eq, %arg1, %c0_i32_0 : i32
    %2 = arith.andi %0, %1 : i1
    %c0_i32_1 = arith.constant 0 : i32
    %3 = arith.cmpi eq, %arg2, %c0_i32_1 : i32
    %4 = arith.andi %2, %3 : i1
    %5 = arith.extui %4 : i1 to i32
    %c0_i32_2 = arith.constant 0 : i32
    %6 = arith.cmpi ne, %5, %c0_i32_2 : i32
    scf.if %6 {
      %c0_19 = arith.constant 0 : index
      %c0_20 = arith.constant 0 : index
      %36 = vector.load %arg5[%c0_19, %c0_20] : memref<256x128xbf16, #tpu.memory_space<vmem>>, vector<256x128xbf16>
      %c0_21 = arith.constant 0 : index
      %c0_22 = arith.constant 0 : index
      %37 = vector.load %arg13[%c0_21, %c0_22] : memref<256x128xbf16, #tpu.memory_space<vmem>>, vector<256x128xbf16>
      tpu.vector_store %arg13[%c0_21, %c0_22], %36 {strides = array<i32>} : memref<256x128xbf16, #tpu.memory_space<vmem>>, vector<256x128xbf16>,
      %cst_23 = arith.constant 0.000000e+00 : bf16
      %38 = vector.broadcast %cst_23 : bf16 to vector<256x128xbf16>
      %c0_24 = arith.constant 0 : index
      %c0_25 = arith.constant 0 : index
      %39 = vector.load %arg14[%c0_24, %c0_25] : memref<256x128xbf16, #tpu.memory_space<vmem>>, vector<256x128xbf16>
      tpu.vector_store %arg14[%c0_24, %c0_25], %38 {strides = array<i32>} : memref<256x128xbf16, #tpu.memory_space<vmem>>, vector<256x128xbf16>,
      %cst_26 = arith.constant 0.000000e+00 : f32
      %40 = vector.broadcast %cst_26 : f32 to vector<8x128xf32>
      %c0_27 = arith.constant 0 : index
      %c0_28 = arith.constant 0 : index
      %41 = vector.load %arg12[%c0_27, %c0_28] : memref<8x128xf32, #tpu.memory_space<vmem>>, vector<8x128xf32>
      tpu.vector_store %arg12[%c0_27, %c0_28], %40 {strides = array<i32>} : memref<8x128xf32, #tpu.memory_space<vmem>>, vector<8x128xf32>,
      %cst_29 = arith.constant 0.000000e+00 : f32
      %42 = vector.broadcast %cst_29 : f32 to vector<8x128xf32>
      %c0_30 = arith.constant 0 : index
      %c0_31 = arith.constant 0 : index
      %43 = vector.load %arg10[%c0_30, %c0_31] : memref<8x128xf32, #tpu.memory_space<vmem>>, vector<8x128xf32>
      tpu.vector_store %arg10[%c0_30, %c0_31], %42 {strides = array<i32>} : memref<8x128xf32, #tpu.memory_space<vmem>>, vector<8x128xf32>,
    } else {
    }
    %c0_i32_3 = arith.constant 0 : i32
    %7 = arith.cmpi eq, %arg2, %c0_i32_3 : i32
    %8 = arith.extui %7 : i1 to i32
    %c0_i32_4 = arith.constant 0 : i32
    %9 = arith.cmpi ne, %8, %c0_i32_4 : i32
    scf.if %9 {
      %cst_19 = arith.constant 0.000000e+00 : f32
      %36 = vector.broadcast %cst_19 : f32 to vector<128x128xf32>
      %c0_20 = arith.constant 0 : index
      %c0_21 = arith.constant 0 : index
      %37 = vector.load %arg11[%c0_20, %c0_21] : memref<128x128xf32, #tpu.memory_space<vmem>>, vector<128x128xf32>
      tpu.vector_store %arg11[%c0_20, %c0_21], %36 {strides = array<i32>} : memref<128x128xf32, #tpu.memory_space<vmem>>, vector<128x128xf32>,
    } else {
    }
    %c128_i32 = arith.constant 128 : i32
    %10 = arith.muli %arg2, %c128_i32 : i32
    %11 = tpu.assume_multiple %10, 128 : i32
    %12 = arith.index_cast %11 : i32 to index
    %c0 = arith.constant 0 : index
    %13 = vector.load %arg13[%12, %c0] : memref<256x128xbf16, #tpu.memory_space<vmem>>, vector<128x128xbf16>
    %14 = arith.index_cast %11 : i32 to index
    %c0_5 = arith.constant 0 : index
    %15 = vector.load %arg14[%14, %c0_5] : memref<256x128xbf16, #tpu.memory_space<vmem>>, vector<128x128xbf16>
    %c2_i32 = arith.constant 2 : i32
    %c0_i32_6 = arith.constant 0 : i32
    %16 = arith.cmpi eq, %c2_i32, %c0_i32_6 : i32
    %c1_i32 = arith.constant 1 : i32
    %17 = arith.select %16, %c1_i32, %c2_i32 : i32
    %18 = arith.remsi %arg0, %17 : i32
    %c0_i32_7 = arith.constant 0 : i32
    %19 = arith.cmpi ne, %18, %c0_i32_7 : i32
    %c0_i32_8 = arith.constant 0 : i32
    %20 = arith.cmpi slt, %18, %c0_i32_8 : i32
    %c0_i32_9 = arith.constant 0 : i32
    %21 = arith.cmpi slt, %17, %c0_i32_9 : i32
    %22 = arith.xori %20, %21 : i1
    %23 = arith.andi %22, %19 : i1
    %24 = arith.addi %18, %17 : i32
    %25 = arith.select %23, %24, %18 : i32
    %c0_i32_10 = arith.constant 0 : i32
    %26 = arith.cmpi eq, %25, %c0_i32_10 : i32
    %27 = arith.select %26, %13, %15 : vector<128x128xbf16>
    %c0_11 = arith.constant 0 : index
    %c0_12 = arith.constant 0 : index
    %28 = vector.load %arg11[%c0_11, %c0_12] : memref<128x128xf32, #tpu.memory_space<vmem>>, vector<128x128xf32>
    %c0_13 = arith.constant 0 : index
    %c0_14 = arith.constant 0 : index
    %29 = vector.load %arg3[%c0_13, %c0_14] : memref<128x128xbf16, #tpu.memory_space<vmem>>, vector<128x128xbf16>
    %cst = arith.constant dense<0.000000e+00> : vector<128x128xf32>
    %30 = tpu.matmul %29, %27, %cst {dimension_numbers = #tpu.dot_dimension_numbers<[1], [0], [0], [1], [0, 0, 1, 1], [], []>} : vector<128x128xbf16>, vector<128x128xbf16>, vector<128x128xf32> -> vector<128x128xf32>
    %31 = arith.addf %28, %30 : vector<128x128xf32>
    %c0_15 = arith.constant 0 : index
    %c0_16 = arith.constant 0 : index
    %32 = vector.load %arg11[%c0_15, %c0_16] : memref<128x128xf32, #tpu.memory_space<vmem>>, vector<128x128xf32>
    tpu.vector_store %arg11[%c0_15, %c0_16], %31 {strides = array<i32>} : memref<128x128xf32, #tpu.memory_space<vmem>>, vector<128x128xf32>,
    %c1_i32_17 = arith.constant 1 : i32
    %33 = arith.cmpi eq, %arg2, %c1_i32_17 : i32
    %34 = arith.extui %33 : i1 to i32
    %c0_i32_18 = arith.constant 0 : i32
    %35 = arith.cmpi ne, %34, %c0_i32_18 : i32
    scf.if %35 {
      %36 = arith.index_cast %arg0 : i32 to index
      %c0_19 = arith.constant 0 : index
      %c0_20 = arith.constant 0 : index
      %37 = vector.load %arg6[%36, %c0_19, %c0_20] : memref<5x128x128xbf16, #tpu.memory_space<vmem>>, vector<1x128x128xbf16>
      %38 = vector.shape_cast %37 : vector<1x128x128xbf16> to vector<128x128xbf16>
      %39 = arith.index_cast %arg0 : i32 to index
      %c0_21 = arith.constant 0 : index
      %c0_22 = arith.constant 0 : index
      %40 = vector.load %arg7[%39, %c0_21, %c0_22] : memref<5x1x128xf32, #tpu.memory_space<vmem>>, vector<1x1x128xf32>
      %41 = vector.shape_cast %40 : vector<1x1x128xf32> to vector<1x128xf32>
      %42 = arith.index_cast %arg0 : i32 to index
      %c0_23 = arith.constant 0 : index
      %c0_24 = arith.constant 0 : index
      %43 = vector.load %arg8[%42, %c0_23, %c0_24] : memref<5x128x128xbf16, #tpu.memory_space<vmem>>, vector<1x128x128xbf16>
      %44 = vector.shape_cast %43 : vector<1x128x128xbf16> to vector<128x128xbf16>
      %45 = arith.index_cast %arg0 : i32 to index
      %c0_25 = arith.constant 0 : index
      %c0_26 = arith.constant 0 : index
      %46 = vector.load %arg9[%45, %c0_25, %c0_26] : memref<5x1x128xf32, #tpu.memory_space<vmem>>, vector<1x1x128xf32>
      %47 = vector.shape_cast %46 : vector<1x1x128xf32> to vector<1x128xf32>
      %c0_27 = arith.constant 0 : index
      %c0_28 = arith.constant 0 : index
      %48 = vector.load %arg11[%c0_27, %c0_28] : memref<128x128xf32, #tpu.memory_space<vmem>>, vector<128x128xf32>
      %49 = arith.truncf %48 : vector<128x128xf32> to vector<128x128xbf16>
      %cst_29 = arith.constant dense<0.000000e+00> : vector<128x128xf32>
      %50 = tpu.matmul %49, %38, %cst_29 {dimension_numbers = #tpu.dot_dimension_numbers<[1], [0], [0], [1], [0, 0, 1, 1], [], []>} : vector<128x128xbf16>, vector<128x128xbf16>, vector<128x128xf32> -> vector<128x128xf32>
      %51 = vector.broadcast %41 : vector<1x128xf32> to vector<128x128xf32>
      %52 = arith.addf %50, %51 : vector<128x128xf32>
      %cst_30 = arith.constant 0.000000e+00 : f32
      %53 = vector.broadcast %cst_30 : f32 to vector<128x128xf32>
      %54 = arith.maximumf %52, %53 : vector<128x128xf32>
      %55 = arith.truncf %54 : vector<128x128xf32> to vector<128x128xbf16>
      %cst_31 = arith.constant dense<0.000000e+00> : vector<128x128xf32>
      %56 = tpu.matmul %55, %44, %cst_31 {dimension_numbers = #tpu.dot_dimension_numbers<[1], [0], [0], [1], [0, 0, 1, 1], [], []>} : vector<128x128xbf16>, vector<128x128xbf16>, vector<128x128xf32> -> vector<128x128xf32>
      %57 = vector.broadcast %47 : vector<1x128xf32> to vector<128x128xf32>
      %58 = arith.addf %56, %57 : vector<128x128xf32>
      %cst_32 = arith.constant 0.000000e+00 : f32
      %59 = vector.broadcast %cst_32 : f32 to vector<128x128xf32>
      %60 = arith.maximumf %58, %59 : vector<128x128xf32>
      %61 = arith.truncf %60 : vector<128x128xf32> to vector<128x128xbf16>
      %c128_i32_33 = arith.constant 128 : i32
      %62 = arith.muli %arg1, %c128_i32_33 : i32
      %63 = tpu.assume_multiple %62, 128 : i32
      %c2_i32_34 = arith.constant 2 : i32
      %c0_i32_35 = arith.constant 0 : i32
      %64 = arith.cmpi eq, %c2_i32_34, %c0_i32_35 : i32
      %c1_i32_36 = arith.constant 1 : i32
      %65 = arith.select %64, %c1_i32_36, %c2_i32_34 : i32
      %66 = arith.remsi %arg0, %65 : i32
      %c0_i32_37 = arith.constant 0 : i32
      %67 = arith.cmpi ne, %66, %c0_i32_37 : i32
      %c0_i32_38 = arith.constant 0 : i32
      %68 = arith.cmpi slt, %66, %c0_i32_38 : i32
      %c0_i32_39 = arith.constant 0 : i32
      %69 = arith.cmpi slt, %65, %c0_i32_39 : i32
      %70 = arith.xori %68, %69 : i1
      %71 = arith.andi %70, %67 : i1
      %72 = arith.addi %66, %65 : i32
      %73 = arith.select %71, %72, %66 : i32
      %c0_i32_40 = arith.constant 0 : i32
      %74 = arith.cmpi eq, %73, %c0_i32_40 : i32
      %75 = arith.extui %74 : i1 to i32
      %c0_i32_41 = arith.constant 0 : i32
      %76 = arith.cmpi ne, %75, %c0_i32_41 : i32
      scf.if %76 {
        %93 = arith.index_cast %63 : i32 to index
        %c0_51 = arith.constant 0 : index
        %94 = vector.load %arg14[%93, %c0_51] : memref<256x128xbf16, #tpu.memory_space<vmem>>, vector<128x128xbf16>
        tpu.vector_store %arg14[%93, %c0_51], %61 {strides = array<i32>} : memref<256x128xbf16, #tpu.memory_space<vmem>>, vector<128x128xbf16>,
      } else {
      }
      %c2_i32_42 = arith.constant 2 : i32
      %c0_i32_43 = arith.constant 0 : i32
      %77 = arith.cmpi eq, %c2_i32_42, %c0_i32_43 : i32
      %c1_i32_44 = arith.constant 1 : i32
      %78 = arith.select %77, %c1_i32_44, %c2_i32_42 : i32
      %79 = arith.remsi %arg0, %78 : i32
      %c0_i32_45 = arith.constant 0 : i32
      %80 = arith.cmpi ne, %79, %c0_i32_45 : i32
      %c0_i32_46 = arith.constant 0 : i32
      %81 = arith.cmpi slt, %79, %c0_i32_46 : i32
      %c0_i32_47 = arith.constant 0 : i32
      %82 = arith.cmpi slt, %78, %c0_i32_47 : i32
      %83 = arith.xori %81, %82 : i1
      %84 = arith.andi %83, %80 : i1
      %85 = arith.addi %79, %78 : i32
      %86 = arith.select %84, %85, %79 : i32
      %c1_i32_48 = arith.constant 1 : i32
      %87 = arith.cmpi eq, %86, %c1_i32_48 : i32
      %88 = arith.extui %87 : i1 to i32
      %c0_i32_49 = arith.constant 0 : i32
      %89 = arith.cmpi ne, %88, %c0_i32_49 : i32
      scf.if %89 {
        %93 = arith.index_cast %63 : i32 to index
        %c0_51 = arith.constant 0 : index
        %94 = vector.load %arg13[%93, %c0_51] : memref<256x128xbf16, #tpu.memory_space<vmem>>, vector<128x128xbf16>
        tpu.vector_store %arg13[%93, %c0_51], %61 {strides = array<i32>} : memref<256x128xbf16, #tpu.memory_space<vmem>>, vector<128x128xbf16>,
      } else {
      }
      %c4_i32 = arith.constant 4 : i32
      %90 = arith.cmpi eq, %arg0, %c4_i32 : i32
      %91 = arith.extui %90 : i1 to i32
      %c0_i32_50 = arith.constant 0 : i32
      %92 = arith.cmpi ne, %91, %c0_i32_50 : i32
      scf.if %92 {
        %c0_51 = arith.constant 0 : index
        %c0_52 = arith.constant 0 : index
        %93 = vector.load %arg12[%c0_51, %c0_52] : memref<8x128xf32, #tpu.memory_space<vmem>>, vector<8x128xf32>
        %c0_53 = arith.constant 0 : index
        %c0_54 = arith.constant 0 : index
        %94 = vector.load %arg4[%c0_53, %c0_54] : memref<8x128xbf16, #tpu.memory_space<vmem>>, vector<8x128xbf16>
        %cst_55 = arith.constant dense<0.000000e+00> : vector<8x128xf32>
        %95 = tpu.matmul %94, %61, %cst_55 {dimension_numbers = #tpu.dot_dimension_numbers<[1], [0], [0], [1], [0, 0, 1, 1], [], []>} : vector<8x128xbf16>, vector<128x128xbf16>, vector<8x128xf32> -> vector<8x128xf32>
        %96 = arith.addf %93, %95 : vector<8x128xf32>
        %c0_56 = arith.constant 0 : index
        %c0_57 = arith.constant 0 : index
        %97 = vector.load %arg12[%c0_56, %c0_57] : memref<8x128xf32, #tpu.memory_space<vmem>>, vector<8x128xf32>
        tpu.vector_store %arg12[%c0_56, %c0_57], %96 {strides = array<i32>} : memref<8x128xf32, #tpu.memory_space<vmem>>, vector<8x128xf32>,
        %c1_i32_58 = arith.constant 1 : i32
        %98 = arith.cmpi eq, %arg1, %c1_i32_58 : i32
        %99 = arith.extui %98 : i1 to i32
        %c0_i32_59 = arith.constant 0 : i32
        %100 = arith.cmpi ne, %99, %c0_i32_59 : i32
        scf.if %100 {
          %c0_60 = arith.constant 0 : index
          %c0_61 = arith.constant 0 : index
          %101 = vector.load %arg12[%c0_60, %c0_61] : memref<8x128xf32, #tpu.memory_space<vmem>>, vector<8x128xf32>
          %102 = tpu.iota {dimensions = array<i32: 1>} : vector<8x128xi32>
          %c8_i32 = arith.constant 8 : i32
          %103 = vector.broadcast %c8_i32 : i32 to vector<8x128xi32>
          %104 = arith.cmpi slt, %102, %103 : vector<8x128xi32>
          %cst_62 = arith.constant -1.000000e+30 : f32
          %105 = vector.broadcast %cst_62 : f32 to vector<8x128xf32>
          %106 = arith.select %104, %101, %105 : vector<8x128xi1>, vector<8x128xf32>
          %cst_63 = arith.constant dense<0xFF800000> : vector<8xf32>
          %107 = vector.multi_reduction <maximumf>, %106, %cst_63 [1] : vector<8x128xf32> to vector<8xf32>
          %108 = vector.shape_cast %107 : vector<8xf32> to vector<8x1xf32>
          %109 = vector.broadcast %108 : vector<8x1xf32> to vector<8x128xf32>
          %110 = arith.subf %106, %109 : vector<8x128xf32>
          %111 = math.exp %110 : vector<8x128xf32>
          %cst_64 = arith.constant dense<0.000000e+00> : vector<8xf32>
          %112 = vector.multi_reduction <add>, %111, %cst_64 [1] : vector<8x128xf32> to vector<8xf32>
          %113 = vector.shape_cast %112 : vector<8xf32> to vector<8x1xf32>
          %114 = vector.broadcast %113 : vector<8x1xf32> to vector<8x128xf32>
          %115 = arith.divf %111, %114 : vector<8x128xf32>
          %c0_65 = arith.constant 0 : index
          %c0_66 = arith.constant 0 : index
          %116 = vector.load %arg10[%c0_65, %c0_66] : memref<8x128xf32, #tpu.memory_space<vmem>>, vector<8x128xf32>
          tpu.vector_store %arg10[%c0_65, %c0_66], %115 {strides = array<i32>} : memref<8x128xf32, #tpu.memory_space<vmem>>, vector<8x128xf32>,
        } else {
        }
      } else {
      }
    } else {
    }
    return
  }
  func.func @transform_0(%arg0: i32, %arg1: i32, %arg2: i32) -> (i32, i32) {
    %c0_i32 = arith.constant 0 : i32
    return %arg1, %arg2 : i32, i32
  }
  func.func @transform_1(%arg0: i32, %arg1: i32, %arg2: i32) -> (i32, i32) {
    %c0_i32 = arith.constant 0 : i32
    %c0_i32_0 = arith.constant 0 : i32
    return %c0_i32, %arg1 : i32, i32
  }
  func.func @transform_2(%arg0: i32, %arg1: i32, %arg2: i32) -> (i32, i32) {
    %c0_i32 = arith.constant 0 : i32
    %c0_i32_0 = arith.constant 0 : i32
    %c0_i32_1 = arith.constant 0 : i32
    return %c0_i32, %c0_i32_0 : i32, i32
  }
  func.func @transform_3(%arg0: i32, %arg1: i32, %arg2: i32) -> (i32, i32, i32) {
    %c0_i32 = arith.constant 0 : i32
    %c0_i32_0 = arith.constant 0 : i32
    %c0_i32_1 = arith.constant 0 : i32
    %c0_i32_2 = arith.constant 0 : i32
    return %c0_i32, %c0_i32_0, %c0_i32_1 : i32, i32, i32
  }
  func.func @transform_4(%arg0: i32, %arg1: i32, %arg2: i32) -> (i32, i32, i32) {
    %c0_i32 = arith.constant 0 : i32
    %c0_i32_0 = arith.constant 0 : i32
    %c0_i32_1 = arith.constant 0 : i32
    %c0_i32_2 = arith.constant 0 : i32
    return %c0_i32, %c0_i32_0, %c0_i32_1 : i32, i32, i32
  }
  func.func @transform_5(%arg0: i32, %arg1: i32, %arg2: i32) -> (i32, i32, i32) {
    %c0_i32 = arith.constant 0 : i32
    %c0_i32_0 = arith.constant 0 : i32
    %c0_i32_1 = arith.constant 0 : i32
    %c0_i32_2 = arith.constant 0 : i32
    return %c0_i32, %c0_i32_0, %c0_i32_1 : i32, i32, i32
  }
  func.func @transform_6(%arg0: i32, %arg1: i32, %arg2: i32) -> (i32, i32, i32) {
    %c0_i32 = arith.constant 0 : i32
    %c0_i32_0 = arith.constant 0 : i32
    %c0_i32_1 = arith.constant 0 : i32
    %c0_i32_2 = arith.constant 0 : i32
    return %c0_i32, %c0_i32_0, %c0_i32_1 : i32, i32, i32
  }
  func.func @transform_7(%arg0: i32, %arg1: i32, %arg2: i32) -> (i32, i32) {
    %c0_i32 = arith.constant 0 : i32
    %c0_i32_0 = arith.constant 0 : i32
    %c0_i32_1 = arith.constant 0 : i32
    return %c0_i32, %c0_i32_0 : i32, i32
  }
}

</mosaic_0001>

<bundles_post_ra>
// kernel: tpu_custom_call.1
= control target key start
LH: loop header
LB: loop body
LE: loop exit
PB: predicated region body
PF: predicated region fallthrough
CT: control target
= control target key end

     0   :  { %s2831_s0 = inlined_call_operand.hbm [shape: bf16[256,256], index: 0, kind: input, shape index: {}]   ;;  %s2832_s1 = inlined_call_operand.hbm [shape: bf16[8,256], index: 1, kind: input, shape index: {}]   ;;  %s2833_s2 = inlined_call_operand.hbm [shape: bf16[256,128], index: 2, kind: input, shape index: {}]   ;;  %s2834_s3 = inlined_call_operand.hbm [shape: bf16[5,128,128], index: 3, kind: input, shape index: {}]   ;;  %s2835_s4 = inlined_call_operand.hbm [shape: f32[5,1,128], index: 4, kind: input, shape index: {}]   ;;  %s2836_s5 = inlined_call_operand.hbm [shape: bf16[5,128,128], index: 5, kind: input, shape index: {}]   ;;  %s2837_s6 = inlined_call_operand.vmem [shape: f32[5,1,128], index: 6, kind: input, shape index: {}]   ;;  %s2838_s7 = inlined_call_operand.hbm [shape: f32[8,128], index: 7, kind: output, shape index: {}]  }
   0x1   :  { %2845 = sst [smem:[#allocation29_spill]] %s2833_s2 }
   0x2   :  { %2846 = sst [smem:[#allocation30_spill]] %s2834_s3 }
   0x3   :  { %2847 = sst [smem:[#allocation31_spill]] %s2835_s4 }
   0x4   :  { %2848 = sst [smem:[#allocation32_spill]] %s2836_s5 }
   0x5   :  { %2849 = sst [smem:[#allocation33_spill]] %s2837_s6 }
   0x6   :  { %2850 = sst [smem:[#allocation34_spill]] %s2838_s7 }
   0x7   :  { %12 = vsyncpa [#allocation7], 0 }
   0x8   :  { %14 = vsyncpa [#allocation7 + $0x1], 0 }
   0x9   :  { %15 = vsyncpa [#allocation10], 0 }
   0xa   :  { %17 = vsyncpa [#allocation10 + $0x1], 0 }
   0xb   :  { %18 = vsyncpa [#allocation13], 0 }
   0xc   :  { %19 = vsyncpa [#allocation16], 0 }
   0xd   :  { %20 = vsyncpa [#allocation8], 0  ;;  %s2317_s24 = smov 0   ;;  %s2319_s25 = smov 0  }
   0xe   :  { %s2321_s26 = smov 0   ;;  %s2323_s27 = smov 0  }
   0xf   :  { %s2325_s28 = smov 0   ;;  %s2327_s29 = smov 0  }
  0x10   :  { %s2329_s30 = smov 0   ;;  %s2331_s8 = smov 0  }
  0x11   :  { %s2333_s9 = smov 0   ;;  %s2335_s10 = smov 0  }
  0x12   :  { %s2337_s11 = smov 0   ;;  %s2339_s12 = smov 0  }
  0x13   :  { %s2341_s13 = smov 0  }
  0x14 LB: > { %2851 = sst [smem:[#allocation24_spill]] %s2238_s30  ;;  %s2381_s14 = sadd.s32 4294967295, %s2262_s13   ;;  %s2262_s13 = sphi %s2341_s13, %s26_s13   ;;  %s2258_s12 = sphi %s2339_s12, %s2896_s12   ;;  %s2254_s11 = sphi %s2337_s11, %s2895_s11   ;;  %s2250_s10 = sphi %s2335_s10, %s2894_s10   ;;  %s2246_s9 = sphi %s2333_s9, %s2893_s9   ;;  %s2242_s8 = sphi %s2331_s8, %s2892_s8   ;;  %s2238_s30 = sphi %s2329_s30, %s2891_s30   ;;  %s2234_s29 = sphi %s2327_s29, %s2890_s29   ;;  %s2230_s28 = sphi %s2325_s28, %s2889_s28   ;;  %s2226_s27 = sphi %s2323_s27, %s2888_s27   ;;  %s2222_s26 = sphi %s2321_s26, %s2887_s26   ;;  %s2218_s25 = sphi %s2319_s25, %s2886_s25   ;;  %s2214_s24 = sphi %s2317_s24, %s2885_s24  }
  0x15   : > { %2852 = sst [smem:[#allocation25_spill]] %s2242_s8  ;;  %p67_p0 = scmp.ne.s32.totalorder %s2230_s28, %s2226_s27 }
  0x16   : > { %p68_p1 = scmp.eq.s32.totalorder %s2381_s14, 0  ;;  %p1452_p2 = scmp.ge.s32.totalorder %s2262_s13, 1 }
  0x17   : > { %p230_p3 = scmp.lt.s32.totalorder %s2262_s13, 21  ;;  %s2854_s2 = sld [smem:[#allocation29_spill]] }
  0x18   : > { %p2389_p4 = por %p68_p1, %p67_p0  ;;  %s2264_s20 = smov [#allocation11]  }
  0x19   : > { %p2396_p5 = pnand %p1452_p2, %p230_p3  ;;  %s243_s21 = sshll.u32 %s2264_s20, 4  ;;  %s244_s21 = int_to_ptr.vmem [resolvable:$true] %s243_s21 }
  0x1a   : > { %s2857_s3 = sld [smem:[#allocation30_spill]]  ;;  %s2841_s17 = smov 64  }
  0x1b   : > { %p1774_p6 = pneg %p2396_p5  ;;  %s2267_s20 = smov [#allocation12]  }
  0x1c   : > { %s257_s7 = sshll.u32 %s2267_s20, 4  ;;  %s2858_s4 = sld [smem:[#allocation31_spill]]  ;;  %s258_s7 = int_to_ptr.vmem [resolvable:$true] %s257_s7 }
  0x1d   : > { %s241_s18 = sshll.u32 %s2854_s2, 4  ;;  %p2404_p7 = pnand %p1774_p6, %p68_p1  ;;  %s242_s18 = int_to_ptr.hbm [resolvable:$true] %s241_s18 }
  0x1e   : > { %s2842_s2 = smov 4   ;;  %s2268_s23 = smov [#allocation14]  }
  0x1f   : > { %1777 = dma.hbm_to_vmem [thread:$0]  (!%p2404_p7), %s242_s18, 2048, %s244_s21, [#allocation10], %s2841_s17, %s2841_s17, %s2842_s2  }
  0x20   : > { %s255_s16 = sshll.u32 %s2857_s3, 4  ;;  %s271_s18 = sshll.u32 %s2268_s23, 4  ;;  %s256_s16 = int_to_ptr.hbm [resolvable:$true] %s255_s16  ;;  %s272_s18 = int_to_ptr.vmem [resolvable:$true] %s271_s18 }
  0x21   : > { %1780 = dma.hbm_to_vmem [thread:$0]  (!%p2404_p7), %s256_s16, 5120, %s258_s7, [#allocation13], %s2841_s17, %s2841_s17, %s2842_s2  }
  0x22   : > { %s269_s8 = sshll.u32 %s2858_s4, 4  ;;  %s2859_s5 = sld [smem:[#allocation32_spill]]  ;;  %s270_s8 = int_to_ptr.hbm [resolvable:$true] %s269_s8 }
  0x23   : > { %s2269_s27 = smov 16   ;;  %s2270_s20 = smov 1  }
  0x24   : > { %1783 = dma.hbm_to_vmem [thread:$0]  (!%p2404_p7), %s270_s8, 80, %s272_s18, [#allocation13], %s2269_s27, %s2269_s27, %s2270_s20  }
  0x25   : > { %s2271_s7 = smov [#allocation15]   ;;  %s38_s23 = sadd.s32 1, %s2250_s10 }
  0x26   : > { %s285_s16 = sshll.u32 %s2271_s7, 4  ;;  %s41_s21 = sadd.s32 1, %s2254_s11  ;;  %s286_s16 = int_to_ptr.vmem [resolvable:$true] %s285_s16 }
  0x27   : > { %p39_p8 = scmp.ge.s32.totalorder %s38_s23, 2  ;;  %s45_s6 = sadd.s32 1, %s2258_s12 }
  0x28   : > { %s283_s30 = sshll.u32 %s2859_s5, 4  ;;  %s54_s3 = sadd.s32 1, %s2234_s29  ;;  %s284_s30 = int_to_ptr.hbm [resolvable:$true] %s283_s30 }
  0x29   : > { %1786 = dma.hbm_to_vmem [thread:$0]  (!%p2404_p7), %s284_s30, 5120, %s286_s16, [#allocation16], %s2841_s17, %s2841_s17, %s2842_s2  }
  0x2a   : > { %p61_p9 = scmp.ne.s32.totalorder %s2234_s29, %s2230_s28  ;;  %s2898_s23 = smov (%p39_p8, %s38_s23), 0 }
  0x2b   : > { %2860 = sst [smem:[#allocation26_spill]] %s2898_s23  ;;  %s2900_s21 = smov (!%p39_p8, %s41_s21), %s2254_s11 }
  0x2c   : > { %s50_s8 = ssub.s32 %s2250_s10, %s2898_s23  ;;  %p62_p10 = scmp.eq.s32.totalorder %s2262_s13, 0 }
  0x2d   : > { %p43_p11 = scmp.ge.s32.totalorder %s2900_s21, 2  ;;  %p1798_p12 = scmp.lt.s32.totalorder %s2262_s13, 20 }
  0x2e   : > { %p2449_p13 = por %p62_p10, %p61_p9  ;;  %s302_s18 = sand.u32 1, %s2234_s29  }
  0x2f   : > { %s2902_s21 = smov (%p43_p11, %s2900_s21), 0  ;;  %s2904_s6 = smov (!%p43_p11, %s45_s6), %s2258_s12 }
  0x30   : > { %2862 = sst [smem:[#allocation27_spill]] %s2902_s21  ;;  %s49_s30 = ssub.s32 %s2254_s11, %s2902_s21 }
  0x31   : > { %p47_p0 = scmp.ge.s32.totalorder %s2904_s6, 5  ;;  %s51_s27 = sor.u32 %s50_s8, %s49_s30 }
  0x32   : > { %p52_p2 = scmp.eq.s32.totalorder %s51_s27, 0  ;;  %s1458_s20 = sshll.u32 %s302_s18, 6 }
  0x33   : > { %s2906_s6 = smov (%p47_p0, %s2904_s6), 0  ;;  %s1589_s16 = sshll.u32 %s2254_s11, 5 }
  0x34   : > { %2863 = sst [smem:[#allocation28_spill]] %s2906_s6  ;;  %s311_s17 = sadd.s32 %s2250_s10, %s1589_s16 }
  0x35   : > { %s2462_s7 = scalar_select %p52_p2, %s2234_s29, %s54_s3  }
  0x36   : > { %s306_s2 = scalar_lea.vmem [#allocation6], %s1458_s20  ;;  %s1461_s5 = sshll.u32 %s311_s17, 2 }
  0x37   : > { %s316_s4 = sshll.u32 %s306_s2, 4  ;;  %s313_s3 = scalar_lea.hbm %s2831_s0, %s1461_s5  ;;  %s317_s4 = int_to_ptr.vmem [resolvable:$true] %s316_s4 }
  0x38   : > { %p1788_p3 = pnand %p1798_p12, %p2449_p13  ;;  %s314_s6 = sshll.u32 %s313_s3, 4  ;;  %s315_s6 = int_to_ptr.hbm [resolvable:$true] %s314_s6 }
  0x39   : > { %s303_s16 = scalar_lea.sflag [#allocation7], %s302_s18  ;;  %s2272_s21 = smov 128  }
  0x3a   : > { %s2864_s20 = smov 4   ;;  %s2865_s23 = smov 64  }
  0x3b   : > { %1790 = dma.hbm_to_vmem [thread:$0]  (!%p1788_p3), %s315_s6, 1024, %s317_s4, %s303_s16, %s2272_s21, %s2865_s23, %s2864_s20  }
  0x3c   : > { %p78_p6 = scmp.eq.s32.totalorder %s49_s30, 0  ;;  %s80_s2 = sadd.s32 1, %s2222_s26 }
  0x3d   : > { %p87_p7 = scmp.ne.s32.totalorder %s2222_s26, %s2218_s25  ;;  %p93_p8 = scmp.ne.s32.totalorder %s2218_s25, %s2214_s24 }
  0x3e   : > { %s2481_s17 = scalar_select %p78_p6, %s2222_s26, %s80_s2  }
  0x3f   : > { %p89_p9 = por %p87_p7, %p62_p10  ;;  %p2487_p11 = por %p93_p8, %p68_p1 }
  0x40   : > { %s326_s22 = sand.u32 1, %s2262_s13   ;;  %s328_s18 = sand.u32 1, %s2222_s26  }
  0x41   : > { %s1462_s8 = sshll.u32 %s328_s18, 2  ;;  %s1463_s27 = sshll.u32 %s2254_s11, 2 }
  0x42   : > { %s334_s23 = scalar_lea.hbm %s2832_s1, %s1463_s27  ;;  %s330_s21 = scalar_lea.vmem [#allocation9], %s1462_s8 }
  0x43   : > { %s338_s6 = sshll.u32 %s330_s21, 4  ;;  %s336_s24 = sshll.u32 %s334_s23, 4  ;;  %s339_s6 = int_to_ptr.vmem [resolvable:$true] %s338_s6  ;;  %s337_s24 = int_to_ptr.hbm [resolvable:$true] %s336_s24 }
  0x44   : > { %p1791_p10 = pnand %p1798_p12, %p89_p9  ;;  %s327_s30 = scalar_lea.sflag [#allocation10], %s326_s22 }
  0x45   : > { %347 = sbr.rel (%p2396_p5) target bundleno = 1249 (0x4e1), region = 48  ;;  %s349_s16 = sand.u32 (!%p2396_p5), 1, %s2230_s28  }
  0x46   : > { %1793 = dma.hbm_to_vmem [thread:$0]  (!%p1791_p10), %s337_s24, 64, %s339_s6, %s327_s30  }
  0x47   : > { %s1465_s20 = sshll.u32 (!%p2396_p5), %s349_s16, 6  ;;  %s350_s2 = scalar_lea.sflag (!%p2396_p5), [#allocation7], %s349_s16 }
  0x48   : > { %s2502_s18 = scalar_lea.vmem (!%p2396_p5), [#allocation6], %s1465_s20 }
  0x4a   : > { %2189 = dma.done.wait (%p2389_p4), %s350_s2, 1024  }
  0x4b   : > { %2191 = vsyncadd (%p2389_p4), %s350_s2, 4294966272  ;;  %s359_s22 = sand.u32 1, %s2381_s14   ;;  %s361_s8 = sand.u32 1, %s2218_s25  }
  0x4c   : > { %s2510_s27 = sshll.u32 %s361_s8, 2  ;;  %s360_s19 = scalar_lea.sflag [#allocation10], %s359_s22 }
  0x4d   : > { %s363_s3 = scalar_lea.vmem [#allocation9], %s2510_s27 }
  0x4e   : > { %2193 = dma.done.wait (%p2487_p11), %s360_s19, 64  }
  0x4f   : > { %2195 = vsyncadd (%p2487_p11), %s360_s19, 4294967232 }
  0x50   : > { %2197 = dma.done.wait (%p68_p1), [#allocation10], 2048  }
  0x51   : > { %2199 = vsyncadd (%p68_p1), [#allocation10], 4294965248 }
  0x52   : > { %2201 = dma.done.wait (%p68_p1), [#allocation13], 5200  }
  0x53   : > { %2203 = vsyncadd (%p68_p1), [#allocation13], 4294962096 }
  0x54   : > { %2205 = dma.done.wait (%p68_p1), [#allocation16], 5120  }
  0x55   : > { %2207 = vsyncadd (%p68_p1), [#allocation16], 4294962176  ;;  %s2867_s15 = sld [smem:[#allocation25_spill]]  ;;  %p417_p4 = scmp.eq.s32.totalorder %s2246_s9, 0 }
  0x56   : > { %s2868_s5 = sld [smem:[#allocation24_spill]] }
  0x5b   : > { %p418_p5 = scmp.eq.s32.totalorder %s2867_s15, 0 }
  0x5c   : > { %p421_p13 = scmp.eq.s32.totalorder %s2868_s5, 0 }
  0x5d   : > { %p419_p12 = pnand %p418_p5, %p417_p4 }
  0x5f   : > { %p420_p0 = pneg %p419_p12 }
  0x61   : > { %p422_p2 = pnand %p421_p13, %p420_p0 }
  0x63   : > { %425 = sbr.rel (%p422_p2) target bundleno = 155 (0x9b), region = 76 }
  0x68   : > { %v426_v0 = vld [vmem:[#allocation11] sm:$0xff]   ;;  %v428_v1 = vld [vmem:[#allocation11 + $0x8] sm:$0xff]   ;;  %v430_v2 = vld [vmem:[#allocation11 + $0x10] sm:$0xff]   ;;  %v2273_v16 = vmov 0   ;;  %v2274_v17 = vmov 0.0  }
  0x69   : > { %458 = vst [vmem:[#allocation4] sm:$0xff] %v426_v0   ;;  %v432_v3 = vld [vmem:[#allocation11 + $0x18] sm:$0xff]   ;;  %v434_v4 = vld [vmem:[#allocation11 + $0x20] sm:$0xff]   ;;  %v436_v5 = vld [vmem:[#allocation11 + $0x28] sm:$0xff]  }
  0x6a   : > { %460 = vst [vmem:[#allocation4 + $0x8] sm:$0xff] %v428_v1   ;;  %v438_v6 = vld [vmem:[#allocation11 + $0x30] sm:$0xff]   ;;  %v440_v7 = vld [vmem:[#allocation11 + $0x38] sm:$0xff]   ;;  %v442_v8 = vld [vmem:[#allocation11 + $0x40] sm:$0xff]  }
  0x6b   : > { %462 = vst [vmem:[#allocation4 + $0x10] sm:$0xff] %v430_v2   ;;  %v444_v9 = vld [vmem:[#allocation11 + $0x48] sm:$0xff]   ;;  %v446_v10 = vld [vmem:[#allocation11 + $0x50] sm:$0xff]   ;;  %v448_v11 = vld [vmem:[#allocation11 + $0x58] sm:$0xff]  }
  0x6c   : > { %464 = vst [vmem:[#allocation4 + $0x18] sm:$0xff] %v432_v3   ;;  %v450_v12 = vld [vmem:[#allocation11 + $0x60] sm:$0xff]   ;;  %v452_v13 = vld [vmem:[#allocation11 + $0x68] sm:$0xff]   ;;  %v454_v14 = vld [vmem:[#allocation11 + $0x70] sm:$0xff]  }
  0x6d   : > { %466 = vst [vmem:[#allocation4 + $0x20] sm:$0xff] %v434_v4   ;;  %v456_v15 = vld [vmem:[#allocation11 + $0x78] sm:$0xff]  }
  0x6e   : > { %468 = vst [vmem:[#allocation4 + $0x28] sm:$0xff] %v436_v5  }
  0x6f   : > { %470 = vst [vmem:[#allocation4 + $0x30] sm:$0xff] %v438_v6  }
  0x70   : > { %472 = vst [vmem:[#allocation4 + $0x38] sm:$0xff] %v440_v7  }
  0x71   : > { %474 = vst [vmem:[#allocation4 + $0x40] sm:$0xff] %v442_v8  }
  0x72   : > { %476 = vst [vmem:[#allocation4 + $0x48] sm:$0xff] %v444_v9  }
  0x73   : > { %478 = vst [vmem:[#allocation4 + $0x50] sm:$0xff] %v446_v10  }
  0x74   : > { %480 = vst [vmem:[#allocation4 + $0x58] sm:$0xff] %v448_v11  }
  0x75   : > { %482 = vst [vmem:[#allocation4 + $0x60] sm:$0xff] %v450_v12  }
  0x76   : > { %484 = vst [vmem:[#allocation4 + $0x68] sm:$0xff] %v452_v13  }
  0x77   : > { %486 = vst [vmem:[#allocation4 + $0x70] sm:$0xff] %v454_v14  }
  0x78   : > { %488 = vst [vmem:[#allocation4 + $0x78] sm:$0xff] %v456_v15  }
  0x79   : > { %490 = vst [vmem:[#allocation5] sm:$0xf] %v2273_v16 }
  0x7a   : > { %491 = vst [vmem:[#allocation5 + $0x4] sm:$0xf] %v2273_v16 }
  0x7b   : > { %492 = vst [vmem:[#allocation5 + $0x8] sm:$0xf] %v2273_v16 }
  0x7c   : > { %493 = vst [vmem:[#allocation5 + $0xc] sm:$0xf] %v2273_v16 }
  0x7d   : > { %494 = vst [vmem:[#allocation5 + $0x10] sm:$0xf] %v2273_v16 }
  0x7e   : > { %495 = vst [vmem:[#allocation5 + $0x14] sm:$0xf] %v2273_v16 }
  0x7f   : > { %496 = vst [vmem:[#allocation5 + $0x18] sm:$0xf] %v2273_v16 }
  0x80   : > { %497 = vst [vmem:[#allocation5 + $0x1c] sm:$0xf] %v2273_v16 }
  0x81   : > { %498 = vst [vmem:[#allocation5 + $0x20] sm:$0xf] %v2273_v16 }
  0x82   : > { %499 = vst [vmem:[#allocation5 + $0x24] sm:$0xf] %v2273_v16 }
  0x83   : > { %500 = vst [vmem:[#allocation5 + $0x28] sm:$0xf] %v2273_v16 }
  0x84   : > { %501 = vst [vmem:[#allocation5 + $0x2c] sm:$0xf] %v2273_v16 }
  0x85   : > { %502 = vst [vmem:[#allocation5 + $0x30] sm:$0xf] %v2273_v16 }
  0x86   : > { %503 = vst [vmem:[#allocation5 + $0x34] sm:$0xf] %v2273_v16 }
  0x87   : > { %504 = vst [vmem:[#allocation5 + $0x38] sm:$0xf] %v2273_v16 }
  0x88   : > { %505 = vst [vmem:[#allocation5 + $0x3c] sm:$0xf] %v2273_v16 }
  0x89   : > { %506 = vst [vmem:[#allocation5 + $0x40] sm:$0xf] %v2273_v16 }
  0x8a   : > { %507 = vst [vmem:[#allocation5 + $0x44] sm:$0xf] %v2273_v16 }
  0x8b   : > { %508 = vst [vmem:[#allocation5 + $0x48] sm:$0xf] %v2273_v16 }
  0x8c   : > { %509 = vst [vmem:[#allocation5 + $0x4c] sm:$0xf] %v2273_v16 }
  0x8d   : > { %510 = vst [vmem:[#allocation5 + $0x50] sm:$0xf] %v2273_v16 }
  0x8e   : > { %511 = vst [vmem:[#allocation5 + $0x54] sm:$0xf] %v2273_v16 }
  0x8f   : > { %512 = vst [vmem:[#allocation5 + $0x58] sm:$0xf] %v2273_v16 }
  0x90   : > { %513 = vst [vmem:[#allocation5 + $0x5c] sm:$0xf] %v2273_v16 }
  0x91   : > { %514 = vst [vmem:[#allocation5 + $0x60] sm:$0xf] %v2273_v16 }
  0x92   : > { %515 = vst [vmem:[#allocation5 + $0x64] sm:$0xf] %v2273_v16 }
  0x93   : > { %516 = vst [vmem:[#allocation5 + $0x68] sm:$0xf] %v2273_v16 }
  0x94   : > { %517 = vst [vmem:[#allocation5 + $0x6c] sm:$0xf] %v2273_v16 }
  0x95   : > { %518 = vst [vmem:[#allocation5 + $0x70] sm:$0xf] %v2273_v16 }
  0x96   : > { %519 = vst [vmem:[#allocation5 + $0x74] sm:$0xf] %v2273_v16 }
  0x97   : > { %520 = vst [vmem:[#allocation5 + $0x78] sm:$0xf] %v2273_v16 }
  0x98   : > { %521 = vst [vmem:[#allocation5 + $0x7c] sm:$0xf] %v2273_v16 }
  0x99   : > { %522 = vst [vmem:[#allocation3] sm:$0xff] %v2274_v17 }
  0x9a   : > { %523 = vst [vmem:[#allocation17] sm:$0xff] %v2274_v17 }
  0x9b PF: > { %s2869_s4 = sld [smem:[#allocation24_spill]] }
  0xa1   : > { %p1471_p1 = scmp.ne.s32.totalorder %s2869_s4, 0 }
  0xa3   : > { %526 = sbr.rel (%p1471_p1) target bundleno = 185 (0xb9), region = 80 }
  0xa8   : > { %v2275_v18 = vmov 0.0  }
  0xa9   : > { %527 = vst [vmem:[#allocation2 + $0x30] sm:$0xff] %v2275_v18 }
  0xaa   : > { %528 = vst [vmem:[#allocation2] sm:$0xff] %v2275_v18 }
  0xab   : > { %529 = vst [vmem:[#allocation2 + $0x58] sm:$0xff] %v2275_v18 }
  0xac   : > { %530 = vst [vmem:[#allocation2 + $0x18] sm:$0xff] %v2275_v18 }
  0xad   : > { %531 = vst [vmem:[#allocation2 + $0x50] sm:$0xff] %v2275_v18 }
  0xae   : > { %532 = vst [vmem:[#allocation2 + $0x68] sm:$0xff] %v2275_v18 }
  0xaf   : > { %533 = vst [vmem:[#allocation2 + $0x8] sm:$0xff] %v2275_v18 }
  0xb0   : > { %534 = vst [vmem:[#allocation2 + $0x48] sm:$0xff] %v2275_v18 }
  0xb1   : > { %535 = vst [vmem:[#allocation2 + $0x40] sm:$0xff] %v2275_v18 }
  0xb2   : > { %536 = vst [vmem:[#allocation2 + $0x20] sm:$0xff] %v2275_v18 }
  0xb3   : > { %537 = vst [vmem:[#allocation2 + $0x10] sm:$0xff] %v2275_v18 }
  0xb4   : > { %538 = vst [vmem:[#allocation2 + $0x38] sm:$0xff] %v2275_v18 }
  0xb5   : > { %539 = vst [vmem:[#allocation2 + $0x60] sm:$0xff] %v2275_v18 }
  0xb6   : > { %540 = vst [vmem:[#allocation2 + $0x70] sm:$0xff] %v2275_v18 }
  0xb7   : > { %541 = vst [vmem:[#allocation2 + $0x78] sm:$0xff] %v2275_v18 }
  0xb8   : > { %542 = vst [vmem:[#allocation2 + $0x28] sm:$0xff] %v2275_v18 }
  0xb9 PF: > { %s2870_s23 = sld [smem:[#allocation24_spill]]  ;;  %s583_s6 = ssub.s32 0, %s2246_s9  ;;  %v1592_v30 = vld [vmem:[%s2502_s18 + $0x10] sm:$0xff] }
  0xba   : > { %s1475_s24 = smin.u32 %s2246_s9, %s583_s6  ;;  %p582_p3 = scmp.lt.s32.totalorder %s2246_s9, 0 }
  0xbb   : > { %s585_s16 = sand.u32 1, %s1475_s24  }
  0xbc   : > { %s586_s2 = ssub.s32 0, %s585_s16 }
  0xbd   : > { %s2908_s2 = smov (!%p582_p3, %s586_s2), %s585_s16 }
  0xbe   : > { %p1477_p6 = scmp.lt.s32.totalorder %s2908_s2, 0  ;;  %s592_s22 = sadd.s32 2, %s2908_s2 }
  0xbf   : > { %s1472_s21 = sshll.u32 %s2870_s23, 7  ;;  %p1510_p8 = scmp.ne.s32.totalorder %s2870_s23, 1 }
  0xc0   : > { %s544_s30 = sshra.s32 %s1472_s21, 3  ;;  %s2910_s22 = smov (!%p1477_p6, %s592_s22), %s2908_s2 }
  0xc1   : > { %s1473_s20 = sshll.u32 %s544_s30, 2  ;;  %p594_p7 = scmp.eq.s32.totalorder %s2910_s22, 0 }
  0xc2   : > { %s2540_s8 = scalar_lea.vmem [#allocation4], %s1473_s20  ;;  %s2544_s19 = scalar_lea.vmem [#allocation5], %s1473_s20 }
  0xc3   : > { %v562_v19 = vld [vmem:[%s2540_s8 + $0x38] sm:$0xf]  ;;  %v563_v20 = vld [vmem:[%s2540_s8 + $0x3c] sm:$0xf]  ;;  %s595_s15 = scalar_select %p594_p7, 1, 0 }
  0xc4   : > { %v580_v21 = vld [vmem:[%s2544_s19 + $0x38] sm:$0xf]  ;;  %v581_v22 = vld [vmem:[%s2544_s19 + $0x3c] sm:$0xf]  ;;  %v560_v23 = vld [vmem:[%s2540_s8 + $0x30] sm:$0xf] }
  0xc5   : > { %v561_v24 = vld [vmem:[%s2540_s8 + $0x34] sm:$0xf]  ;;  %v578_v25 = vld [vmem:[%s2544_s19 + $0x30] sm:$0xf]  ;;  %v596_v27 = vstv %s595_s15  ;;  %v558_v28 = vld [vmem:[%s2540_s8 + $0x28] sm:$0xf] }
  0xc6   : > { %v579_v26 = vld [vmem:[%s2544_s19 + $0x34] sm:$0xf]  ;;  %v559_v29 = vld [vmem:[%s2540_s8 + $0x2c] sm:$0xf]  ;;  %vm2554_vm0 = vcmp.eq.s32.totalorder %v596_v27, 1  ;;  %s846_s5 = scalar_lea.vmem (!%p1510_p8), [#allocation14], %s2246_s9 }
  0xc7   : > { %v576_v31 = vld [vmem:[%s2544_s19 + $0x28] sm:$0xf]  ;;  %v577_v32 = vld [vmem:[%s2544_s19 + $0x2c] sm:$0xf]  ;;  %v612_v33 = vsel %vm2554_vm0, %v562_v19, %v580_v21  ;;  %v613_v34 = vsel %vm2554_vm0, %v563_v20, %v581_v22  ;;  %v610_v35 = vsel %vm2554_vm0, %v560_v23, %v578_v25  ;;  %v611_v36 = vsel %vm2554_vm0, %v561_v24, %v579_v26  ;;  %v556_v43 = vld [vmem:[%s2540_s8 + $0x20] sm:$0xf] }
  0xc8   : > { %v724_v37 = vunpack.c.l.b16 %v612_v33  ;;  %v725_v38 = vunpack.c.l.b16 %v613_v34  ;;  %v722_v39 = vunpack.c.l.b16 %v610_v35  ;;  %v723_v40 = vunpack.c.l.b16 %v611_v36  ;;  %v557_v45 = vld [vmem:[%s2540_s8 + $0x24] sm:$0xf]  ;;  %v574_v46 = vld [vmem:[%s2544_s19 + $0x20] sm:$0xf]  ;;  %v554_v53 = vld [vmem:[%s2540_s8 + $0x18] sm:$0xf] }
  0xc9   : > { %v608_v41 = vsel %vm2554_vm0, %v558_v28, %v576_v31  ;;  %v609_v42 = vsel %vm2554_vm0, %v559_v29, %v577_v32  ;;  %v575_v47 = vld [vmem:[%s2544_s19 + $0x24] sm:$0xf]  ;;  %v606_v51 = vsel %vm2554_vm0, %v556_v43, %v574_v46  ;;  %v555_v54 = vld [vmem:[%s2540_s8 + $0x1c] sm:$0xf]  ;;  %v572_v55 = vld [vmem:[%s2544_s19 + $0x18] sm:$0xf] }
  0xca   : > { %v733_v44 = vpack.c.b16 %v725_v38, %v724_v37  ;;  %v732_v48 = vpack.c.b16 %v723_v40, %v722_v39  ;;  %v720_v49 = vunpack.c.l.b16 %v608_v41  ;;  %v721_v50 = vunpack.c.l.b16 %v609_v42  ;;  %v573_v56 = vld [vmem:[%s2544_s19 + $0x1c] sm:$0xf]  ;;  %v552_v62 = vld [vmem:[%s2540_s8 + $0x10] sm:$0xf]  ;;  %v553_v63 = vld [vmem:[%s2540_s8 + $0x14] sm:$0xf] }
  0xcb   : > { %v607_v52 = vsel %vm2554_vm0, %v557_v45, %v575_v47  ;;  %v718_v58 = vunpack.c.l.b16 %v606_v51  ;;  %v604_v60 = vsel %vm2554_vm0, %v554_v53, %v572_v55  ;;  %v605_v61 = vsel %vm2554_vm0, %v555_v54, %v573_v56  ;;  %v570_v0 = vld [vmem:[%s2544_s19 + $0x10] sm:$0xf]  ;;  %v571_v1 = vld [vmem:[%s2544_s19 + $0x14] sm:$0xf]  ;;  %v550_v7 = vld [vmem:[%s2540_s8 + $0x8] sm:$0xf] }
  0xcc   : > { %742 = vmatpush.bf16.msra.mxu0 %v733_v44  ;;  %1710 = vmatpush.bf16.msra.mxu1 %v733_v44  ;;  %v731_v57 = vpack.c.b16 %v721_v50, %v720_v49  ;;  %v719_v59 = vunpack.c.l.b16 %v607_v52  ;;  %v716_v3 = vunpack.c.l.b16 %v604_v60  ;;  %v717_v4 = vunpack.c.l.b16 %v605_v61  ;;  %v551_v8 = vld [vmem:[%s2540_s8 + $0xc] sm:$0xf]  ;;  %v568_v9 = vld [vmem:[%s2544_s19 + $0x8] sm:$0xf]  ;;  %v548_v16 = vld [vmem:[%s2540_s8] sm:$0xf] }
  0xcd   : > { %1711 = vmatpush.bf16.msra.mxu2 %v733_v44  ;;  %1712 = vmatpush.bf16.msra.mxu3 %v733_v44  ;;  %v602_v5 = vsel %vm2554_vm0, %v552_v62, %v570_v0  ;;  %v603_v6 = vsel %vm2554_vm0, %v553_v63, %v571_v1  ;;  %v569_v10 = vld [vmem:[%s2544_s19 + $0xc] sm:$0xf]  ;;  %v600_v14 = vsel %vm2554_vm0, %v550_v7, %v568_v9  ;;  %v549_v17 = vld [vmem:[%s2540_s8 + $0x4] sm:$0xf]  ;;  %v566_v18 = vld [vmem:[%s2544_s19] sm:$0xf] }
  0xce   : > { %v730_v2 = vpack.c.b16 %v719_v59, %v718_v58  ;;  %v729_v11 = vpack.c.b16 %v717_v4, %v716_v3  ;;  %v714_v12 = vunpack.c.l.b16 %v602_v5  ;;  %v715_v13 = vunpack.c.l.b16 %v603_v6  ;;  %v567_v19 = vld [vmem:[%s2544_s19 + $0x4] sm:$0xf]  ;;  %v1590_v29 = vld [vmem:[%s2502_s18] sm:$0xff]  ;;  %v1596_v32 = vld [vmem:[%s2502_s18 + $0x30] sm:$0xff]  ;;  %s2873_s24 = sld [smem:[#allocation33_spill]] (!%p1510_p8)  ;;  %p1579_p9 = scmp.ne.s32.totalorder (!%p1510_p8), %s2910_s22, 0 }
  0xcf   : > { %v601_v15 = vsel %vm2554_vm0, %v551_v8, %v569_v10  ;;  %v712_v21 = vunpack.c.l.b16 %v600_v14  ;;  %v598_v23 = vsel %vm2554_vm0, %v548_v16, %v566_v18  ;;  %v599_v24 = vsel %vm2554_vm0, %v549_v17, %v567_v19  ;;  %v1594_v31 = vld [vmem:[%s2502_s18 + $0x20] sm:$0xff]  ;;  %v1591_v33 = vld [vmem:[%s2502_s18 + $0x8] sm:$0xff]  ;;  %v1593_v34 = vld [vmem:[%s2502_s18 + $0x18] sm:$0xff]  ;;  %s2875_s20 = sld [smem:[#allocation25_spill]] (!%p1510_p8) }
  0xd0   : > { %743 = vmatpush.bf16.msra.mxu0 %v732_v48  ;;  %1713 = vmatpush.bf16.msra.mxu1 %v732_v48  ;;  %v728_v20 = vpack.c.b16 %v715_v13, %v714_v12  ;;  %v713_v22 = vunpack.c.l.b16 %v601_v15  ;;  %v710_v26 = vunpack.c.l.b16 %v598_v23  ;;  %v711_v27 = vunpack.c.l.b16 %v599_v24  ;;  %v1595_v35 = vld [vmem:[%s2502_s18 + $0x28] sm:$0xff]  ;;  %v1597_v36 = vld [vmem:[%s2502_s18 + $0x38] sm:$0xff]  ;;  %v619_v46 = vld [vmem:[#allocation2 + $0x68] sm:$0xff]  ;;  %s1598_s18 = sshll.u32 (!%p1510_p8), %s2246_s9, 6 }
  0xd1   : > { %1714 = vmatpush.bf16.msra.mxu2 %v732_v48  ;;  %1715 = vmatpush.bf16.msra.mxu3 %v732_v48  ;;  %v614_v37 = vld [vmem:[#allocation2 + $0x30] sm:$0xff]  ;;  %v622_v43 = vld [vmem:[#allocation2 + $0x40] sm:$0xff]  ;;  %v620_v58 = vld [vmem:[#allocation2 + $0x8] sm:$0xff]  ;;  %s829_s4 = scalar_lea.vmem (!%p1510_p8), [#allocation12], %s1598_s18  ;;  %s2627_s23 = scalar_lea.vmem (!%p1510_p8), [#allocation15], %s1598_s18 }
  0xd2   : > { %v727_v25 = vpack.c.b16 %v713_v22, %v712_v21  ;;  %v726_v28 = vpack.c.b16 %v711_v27, %v710_v26  ;;  %v618_v38 = vld [vmem:[#allocation2 + $0x50] sm:$0xff]  ;;  %v626_v44 = vld [vmem:[#allocation2 + $0x60] sm:$0xff]  ;;  %v628_v4 = vld [vmem:[#allocation2 + $0x78] sm:$0xff] }
  0xd3   : > { %v615_v45 = vld [vmem:[#allocation2] sm:$0xff]  ;;  %v627_v56 = vld [vmem:[#allocation2 + $0x70] sm:$0xff]  ;;  %v617_v5 = vld [vmem:[#allocation2 + $0x18] sm:$0xff] }
  0xd4   : > { %744 = vmatpush.bf16.msra.mxu0 %v731_v57  ;;  %1716 = vmatpush.bf16.msra.mxu1 %v731_v57  ;;  %v623_v55 = vld [vmem:[#allocation2 + $0x20] sm:$0xff]  ;;  %v624_v3 = vld [vmem:[#allocation2 + $0x10] sm:$0xff]  ;;  %v621_v6 = vld [vmem:[#allocation2 + $0x48] sm:$0xff]  ;;  %s866_s30 = scalar_lea.vmem (!%p1510_p8), %s2873_s24, %s2246_s9 }
  0xd5   : > { %1717 = vmatpush.bf16.msra.mxu2 %v731_v57  ;;  %1718 = vmatpush.bf16.msra.mxu3 %v731_v57  ;;  %v616_v57 = vld [vmem:[#allocation2 + $0x58] sm:$0xff]  ;;  %v629_v16 = vld [vmem:[#allocation2 + $0x28] sm:$0xff]  ;;  %s1578_s2 = sshll.u32 (!%p1510_p8), %s2875_s20, 7 }
  0xd6   : > { %v625_v15 = vld [vmem:[#allocation2 + $0x38] sm:$0xff] }
  0xd8   : > { %745 = vmatpush.bf16.msra.mxu0 %v730_v2  ;;  %1719 = vmatpush.bf16.msra.mxu1 %v730_v2 }
  0xd9   : > { %1720 = vmatpush.bf16.msra.mxu2 %v730_v2  ;;  %1721 = vmatpush.bf16.msra.mxu3 %v730_v2 }
  0xdc   : > { %746 = vmatpush.bf16.msra.mxu0 %v729_v11  ;;  %1722 = vmatpush.bf16.msra.mxu1 %v729_v11 }
  0xdd   : > { %1723 = vmatpush.bf16.msra.mxu2 %v729_v11  ;;  %1724 = vmatpush.bf16.msra.mxu3 %v729_v11 }
  0xe0   : > { %747 = vmatpush.bf16.msra.mxu0 %v728_v20  ;;  %1725 = vmatpush.bf16.msra.mxu1 %v728_v20 }
  0xe1   : > { %1726 = vmatpush.bf16.msra.mxu2 %v728_v20  ;;  %1727 = vmatpush.bf16.msra.mxu3 %v728_v20 }
  0xe4   : > { %748 = vmatpush.bf16.msra.mxu0 %v727_v25  ;;  %1728 = vmatpush.bf16.msra.mxu1 %v727_v25 }
  0xe5   : > { %1729 = vmatpush.bf16.msra.mxu2 %v727_v25  ;;  %1730 = vmatpush.bf16.msra.mxu3 %v727_v25 }
  0xe8   : > { %749 = vmatpush.bf16.msra.mxu0 %v726_v28  ;;  %1731 = vmatpush.bf16.msra.mxu1 %v726_v28 }
  0xe9   : > { %1732 = vmatpush.bf16.msra.mxu2 %v726_v28  ;;  %1733 = vmatpush.bf16.msra.mxu3 %v726_v28 }
  0xeb   : > { %750 = vmatmul.bf16.vlgmr.msra.gmra.mxu0 %v1590_v29  ;;  %760 = vmatmul.bf16.vlgmr.msra.gmra.mxu1 %v1592_v30 }
  0xec   : > { %770 = vmatmul.bf16.vlgmr.msra.gmra.mxu2 %v1594_v31  ;;  %780 = vmatmul.bf16.vlgmr.msra.gmra.mxu3 %v1596_v32 }
  0xfb   : > { %755 = vmatmul.bf16.gmra.mxu0 %v1591_v33  ;;  %765 = vmatmul.bf16.gmra.mxu1 %v1593_v34 }
  0xfc   : > { %775 = vmatmul.bf16.gmra.mxu2 %v1595_v35  ;;  %785 = vmatmul.bf16.gmra.mxu3 %v1597_v36 }
 0x168   : > { %v751_v39 = vpop.f32.mrf.mxu0  ;;  %v761_v40 = vpop.f32.mrf.mxu1 }
 0x169   : > { %v791_v41 = vadd.f32 %v751_v39, %v614_v37  ;;  %v795_v42 = vadd.f32 %v761_v40, %v618_v38 }
 0x16b   : > { %807 = vst [vmem:[#allocation2 + $0x30] sm:$0xff] %v791_v41 }
 0x16c   : > { %811 = vst [vmem:[#allocation2 + $0x50] sm:$0xff] %v795_v42 }
 0x16f   : > { %v771_v47 = vpop.f32.mrf.mxu2  ;;  %v781_v48 = vpop.f32.mrf.mxu3 }
 0x170   : > { %v799_v49 = vadd.f32 %v771_v47, %v622_v43  ;;  %v803_v50 = vadd.f32 %v781_v48, %v626_v44  ;;  %v753_v51 = vpop.f32.mrf.mxu0  ;;  %v763_v52 = vpop.f32.mrf.mxu1 }
 0x171   : > { %v792_v53 = vadd.f32 %v753_v51, %v615_v45  ;;  %v796_v54 = vadd.f32 %v763_v52, %v619_v46 }
 0x172   : > { %815 = vst [vmem:[#allocation2 + $0x40] sm:$0xff] %v799_v49 }
 0x173   : > { %819 = vst [vmem:[#allocation2 + $0x60] sm:$0xff] %v803_v50 }
 0x174   : > { %808 = vst [vmem:[#allocation2] sm:$0xff] %v792_v53 }
 0x175   : > { %812 = vst [vmem:[#allocation2 + $0x68] sm:$0xff] %v796_v54 }
 0x177   : > { %v773_v59 = vpop.f32.mrf.mxu2  ;;  %v783_v60 = vpop.f32.mrf.mxu3 }
 0x178   : > { %v800_v61 = vadd.f32 %v773_v59, %v623_v55  ;;  %v804_v62 = vadd.f32 %v783_v60, %v627_v56  ;;  %v756_v63 = vpop.f32.mrf.mxu0  ;;  %v766_v0 = vpop.f32.mrf.mxu1 }
 0x179   : > { %v793_v1 = vadd.f32 %v756_v63, %v616_v57  ;;  %v797_v2 = vadd.f32 %v766_v0, %v620_v58 }
 0x17a   : > { %816 = vst [vmem:[#allocation2 + $0x20] sm:$0xff] %v800_v61 }
 0x17b   : > { %820 = vst [vmem:[#allocation2 + $0x70] sm:$0xff] %v804_v62 }
 0x17c   : > { %809 = vst [vmem:[#allocation2 + $0x58] sm:$0xff] %v793_v1 }
 0x17d   : > { %813 = vst [vmem:[#allocation2 + $0x8] sm:$0xff] %v797_v2 }
 0x17f   : > { %v776_v7 = vpop.f32.mrf.mxu2  ;;  %v786_v8 = vpop.f32.mrf.mxu3 }
 0x180   : > { %v801_v9 = vadd.f32 %v776_v7, %v624_v3  ;;  %v805_v10 = vadd.f32 %v786_v8, %v628_v4  ;;  %v758_v11 = vpop.f32.mrf.mxu0  ;;  %v768_v12 = vpop.f32.mrf.mxu1 }
 0x181   : > { %v794_v13 = vadd.f32 %v758_v11, %v617_v5  ;;  %v798_v14 = vadd.f32 %v768_v12, %v621_v6 }
 0x182   : > { %817 = vst [vmem:[#allocation2 + $0x10] sm:$0xff] %v801_v9 }
 0x183   : > { %821 = vst [vmem:[#allocation2 + $0x78] sm:$0xff] %v805_v10 }
 0x184   : > { %810 = vst [vmem:[#allocation2 + $0x18] sm:$0xff] %v794_v13 }
 0x185   : > { %814 = vst [vmem:[#allocation2 + $0x48] sm:$0xff] %v798_v14 }
 0x187   : > { %v778_v17 = vpop.f32.mrf.mxu2  ;;  %v788_v18 = vpop.f32.mrf.mxu3  ;;  %826 = sbr.rel (%p1510_p8) target bundleno = 1239 (0x4d7), region = 84 }
 0x188   : > { %v802_v19 = vadd.f32 %v778_v17, %v625_v15  ;;  %v806_v20 = vadd.f32 %v788_v18, %v629_v16 }
 0x18a   : > { %818 = vst [vmem:[#allocation2 + $0x38] sm:$0xff] %v802_v19 }
 0x18b   : > { %822 = vst [vmem:[#allocation2 + $0x28] sm:$0xff] %v806_v20 }
 0x18c   : > { %v1606_v21 = vld [vmem:[%s829_s4 + $0x38] sm:$0xff]  ;;  %v1605_v22 = vld [vmem:[%s829_s4 + $0x30] sm:$0xff]  ;;  %v1604_v23 = vld [vmem:[%s829_s4 + $0x28] sm:$0xff]  ;;  %s1152_s18 = sshra.s32 (!%p1579_p9), %s1578_s2, 3 }
 0x18d   : > { %943 = vmatpush.bf16.msra.mxu0 %v1606_v21  ;;  %1734 = vmatpush.bf16.msra.mxu2 %v1606_v21  ;;  %v1603_v24 = vld [vmem:[%s829_s4 + $0x20] sm:$0xff]  ;;  %v1602_v25 = vld [vmem:[%s829_s4 + $0x18] sm:$0xff]  ;;  %v1601_v26 = vld [vmem:[%s829_s4 + $0x10] sm:$0xff] }
 0x18e   : > { %v1600_v27 = vld [vmem:[%s829_s4 + $0x8] sm:$0xff]  ;;  %v868_v28 = vld [vmem:[#allocation2 + $0x30] sm:$0xff]  ;;  %v869_v29 = vld [vmem:[#allocation2] sm:$0xff] }
 0x18f   : > { %v1599_v30 = vld [vmem:[%s829_s4] sm:$0xff]  ;;  %v884_v33 = vpack.c.bf16 %v869_v29, %v868_v28  ;;  %v870_v35 = vld [vmem:[#allocation2 + $0x58] sm:$0xff]  ;;  %v878_v37 = vld [vmem:[#allocation2 + $0x10] sm:$0xff] }
 0x190   : > { %v876_v31 = vld [vmem:[#allocation2 + $0x40] sm:$0xff]  ;;  %v871_v36 = vld [vmem:[#allocation2 + $0x18] sm:$0xff]  ;;  %v1614_v42 = vld [vmem:[%s2627_s23 + $0x30] sm:$0xff] }
 0x191   : > { %944 = vmatpush.bf16.msra.mxu0 %v1605_v22  ;;  %1735 = vmatpush.bf16.msra.mxu2 %v1605_v22  ;;  %v877_v32 = vld [vmem:[#allocation2 + $0x20] sm:$0xff]  ;;  %v879_v38 = vld [vmem:[#allocation2 + $0x38] sm:$0xff]  ;;  %v885_v39 = vpack.c.bf16 %v871_v36, %v870_v35  ;;  %v1613_v43 = vld [vmem:[%s2627_s23 + $0x28] sm:$0xff] }
 0x192   : > { %v888_v34 = vpack.c.bf16 %v877_v32, %v876_v31  ;;  %v889_v40 = vpack.c.bf16 %v879_v38, %v878_v37  ;;  %v1615_v41 = vld [vmem:[%s2627_s23 + $0x38] sm:$0xff]  ;;  %v872_v44 = vld [vmem:[#allocation2 + $0x50] sm:$0xff]  ;;  %v873_v45 = vld [vmem:[#allocation2 + $0x68] sm:$0xff] }
 0x193   : > { %1067 = vmatpush.bf16.msra.mxu1 %v1615_v41  ;;  %1742 = vmatpush.bf16.msra.mxu3 %v1615_v41  ;;  %v880_v46 = vld [vmem:[#allocation2 + $0x60] sm:$0xff]  ;;  %v881_v47 = vld [vmem:[#allocation2 + $0x70] sm:$0xff]  ;;  %v886_v49 = vpack.c.bf16 %v873_v45, %v872_v44  ;;  %v874_v51 = vld [vmem:[#allocation2 + $0x8] sm:$0xff] }
 0x194   : > { %v1612_v48 = vld [vmem:[%s2627_s23 + $0x20] sm:$0xff]  ;;  %v890_v50 = vpack.c.bf16 %v881_v47, %v880_v46  ;;  %v875_v52 = vld [vmem:[#allocation2 + $0x48] sm:$0xff]  ;;  %v882_v53 = vld [vmem:[#allocation2 + $0x78] sm:$0xff] }
 0x195   : > { %945 = vmatpush.bf16.msra.mxu0 %v1604_v23  ;;  %1736 = vmatpush.bf16.msra.mxu2 %v1604_v23  ;;  %v883_v54 = vld [vmem:[#allocation2 + $0x28] sm:$0xff]  ;;  %v887_v55 = vpack.c.bf16 %v875_v52, %v874_v51  ;;  %v1611_v57 = vld [vmem:[%s2627_s23 + $0x18] sm:$0xff]  ;;  %v1610_v58 = vld [vmem:[%s2627_s23 + $0x10] sm:$0xff] }
 0x196   : > { %v891_v56 = vpack.c.bf16 %v883_v54, %v882_v53  ;;  %v1609_v59 = vld [vmem:[%s2627_s23 + $0x8] sm:$0xff]  ;;  %v1608_v60 = vld [vmem:[%s2627_s23] sm:$0xff] }
 0x197   : > { %1068 = vmatpush.bf16.msra.mxu1 %v1614_v42  ;;  %1743 = vmatpush.bf16.msra.mxu3 %v1614_v42  ;;  %v1922_v62 = vld [vmem:[%s846_s5] ss:$0 sm:$0xff]  ;;  %s1580_s5 = sshll.u32 (!%p1579_p9), %s1152_s18, 2 }
 0x198   : > { %v1923_v54 = vld [vmem:[%s866_s30] ss:$0 sm:$0xff]  ;;  %s1155_s4 = scalar_lea.vmem (!%p1579_p9), [#allocation5], %s1580_s5 }
 0x199   : > { %946 = vmatpush.bf16.msra.mxu0 %v1603_v24  ;;  %1737 = vmatpush.bf16.msra.mxu2 %v1603_v24 }
 0x19b   : > { %1069 = vmatpush.bf16.msra.mxu1 %v1613_v43  ;;  %1744 = vmatpush.bf16.msra.mxu3 %v1613_v43 }
 0x19d   : > { %947 = vmatpush.bf16.msra.mxu0 %v1602_v25  ;;  %1738 = vmatpush.bf16.msra.mxu2 %v1602_v25 }
 0x19f   : > { %1070 = vmatpush.bf16.msra.mxu1 %v1612_v48  ;;  %1745 = vmatpush.bf16.msra.mxu3 %v1612_v48 }
 0x1a1   : > { %948 = vmatpush.bf16.msra.mxu0 %v1601_v26  ;;  %1739 = vmatpush.bf16.msra.mxu2 %v1601_v26 }
 0x1a3   : > { %1071 = vmatpush.bf16.msra.mxu1 %v1611_v57  ;;  %1746 = vmatpush.bf16.msra.mxu3 %v1611_v57 }
 0x1a5   : > { %949 = vmatpush.bf16.msra.mxu0 %v1600_v27  ;;  %1740 = vmatpush.bf16.msra.mxu2 %v1600_v27 }
 0x1a7   : > { %1072 = vmatpush.bf16.msra.mxu1 %v1610_v58  ;;  %1747 = vmatpush.bf16.msra.mxu3 %v1610_v58 }
 0x1a9   : > { %950 = vmatpush.bf16.msra.mxu0 %v1599_v30  ;;  %1741 = vmatpush.bf16.msra.mxu2 %v1599_v30 }
 0x1ab   : > { %1073 = vmatpush.bf16.msra.mxu1 %v1609_v59  ;;  %1748 = vmatpush.bf16.msra.mxu3 %v1609_v59 }
 0x1ac   : > { %951 = vmatmul.bf16.vlgmr.msra.gmra.mxu0 %v884_v33  ;;  %971 = vmatmul.bf16.vlgmr.msra.gmra.mxu2 %v888_v34 }
 0x1af   : > { %1074 = vmatpush.bf16.msra.mxu1 %v1608_v60  ;;  %1749 = vmatpush.bf16.msra.mxu3 %v1608_v60 }
 0x1bc   : > { %956 = vmatmul.bf16.gmra.mxu0 %v885_v39  ;;  %976 = vmatmul.bf16.gmra.mxu2 %v889_v40 }
 0x1cc   : > { %961 = vmatmul.bf16.gmra.mxu0 %v886_v49  ;;  %981 = vmatmul.bf16.gmra.mxu2 %v890_v50 }
 0x1dc   : > { %966 = vmatmul.bf16.gmra.mxu0 %v887_v55  ;;  %986 = vmatmul.bf16.gmra.mxu2 %v891_v56 }
 0x229   : > { %v952_v61 = vpop.f32.mrf.mxu0 }
 0x22a   : > { %v953_v63 = vadd.f32 %v1922_v62, %v952_v61 }
 0x22c   : > { %v992_v2 = vmax.f32 %v953_v63, 0.0 }
 0x22f   : > { %v972_v0 = vpop.f32.mrf.mxu2 }
 0x230   : > { %v973_v5 = vadd.f32 %v1922_v62, %v972_v0 }
 0x231   : > { %v954_v1 = vpop.f32.mrf.mxu0 }
 0x232   : > { %v955_v3 = vadd.f32 %v1922_v62, %v954_v1  ;;  %v1000_v10 = vmax.f32 %v973_v5, 0.0 }
 0x234   : > { %v993_v4 = vmax.f32 %v955_v3, 0.0 }
 0x236   : > { %v1008_v6 = vpack.c.bf16 %v993_v4, %v992_v2 }
 0x237   : > { %v974_v7 = vpop.f32.mrf.mxu2 }
 0x238   : > { %v975_v8 = vadd.f32 %v1922_v62, %v974_v7  ;;  %1075 = vmatmul.bf16.vlgmr.msra.gmra.mxu1 %v1008_v6 }
 0x239   : > { %v957_v9 = vpop.f32.mrf.mxu0 }
 0x23a   : > { %v1001_v11 = vmax.f32 %v975_v8, 0.0  ;;  %v958_v13 = vadd.f32 %v1922_v62, %v957_v9 }
 0x23c   : > { %v1012_v12 = vpack.c.bf16 %v1001_v11, %v1000_v10  ;;  %v994_v16 = vmax.f32 %v958_v13, 0.0 }
 0x23e   : > { %1095 = vmatmul.bf16.vlgmr.msra.gmra.mxu3 %v1012_v12 }
 0x23f   : > { %v977_v14 = vpop.f32.mrf.mxu2 }
 0x240   : > { %v978_v19 = vadd.f32 %v1922_v62, %v977_v14 }
 0x241   : > { %v959_v15 = vpop.f32.mrf.mxu0 }
 0x242   : > { %v960_v17 = vadd.f32 %v1922_v62, %v959_v15  ;;  %v1002_v24 = vmax.f32 %v978_v19, 0.0 }
 0x244   : > { %v995_v18 = vmax.f32 %v960_v17, 0.0 }
 0x246   : > { %v1009_v20 = vpack.c.bf16 %v995_v18, %v994_v16 }
 0x247   : > { %v979_v21 = vpop.f32.mrf.mxu2 }
 0x248   : > { %v980_v22 = vadd.f32 %v1922_v62, %v979_v21  ;;  %1080 = vmatmul.bf16.gmra.mxu1 %v1009_v20 }
 0x249   : > { %v962_v23 = vpop.f32.mrf.mxu0 }
 0x24a   : > { %v1003_v25 = vmax.f32 %v980_v22, 0.0  ;;  %v963_v27 = vadd.f32 %v1922_v62, %v962_v23 }
 0x24c   : > { %v1013_v26 = vpack.c.bf16 %v1003_v25, %v1002_v24  ;;  %v996_v30 = vmax.f32 %v963_v27, 0.0 }
 0x24e   : > { %1100 = vmatmul.bf16.gmra.mxu3 %v1013_v26 }
 0x24f   : > { %v982_v28 = vpop.f32.mrf.mxu2 }
 0x250   : > { %v983_v33 = vadd.f32 %v1922_v62, %v982_v28 }
 0x251   : > { %v964_v29 = vpop.f32.mrf.mxu0 }
 0x252   : > { %v965_v31 = vadd.f32 %v1922_v62, %v964_v29  ;;  %v1004_v38 = vmax.f32 %v983_v33, 0.0 }
 0x254   : > { %v997_v32 = vmax.f32 %v965_v31, 0.0 }
 0x256   : > { %v1010_v34 = vpack.c.bf16 %v997_v32, %v996_v30 }
 0x257   : > { %v984_v35 = vpop.f32.mrf.mxu2 }
 0x258   : > { %v985_v36 = vadd.f32 %v1922_v62, %v984_v35  ;;  %1085 = vmatmul.bf16.gmra.mxu1 %v1010_v34 }
 0x259   : > { %v967_v37 = vpop.f32.mrf.mxu0 }
 0x25a   : > { %v1005_v39 = vmax.f32 %v985_v36, 0.0  ;;  %v968_v41 = vadd.f32 %v1922_v62, %v967_v37 }
 0x25c   : > { %v1014_v40 = vpack.c.bf16 %v1005_v39, %v1004_v38  ;;  %v998_v44 = vmax.f32 %v968_v41, 0.0 }
 0x25e   : > { %1105 = vmatmul.bf16.gmra.mxu3 %v1014_v40 }
 0x25f   : > { %v987_v42 = vpop.f32.mrf.mxu2 }
 0x260   : > { %v988_v47 = vadd.f32 %v1922_v62, %v987_v42 }
 0x261   : > { %v969_v43 = vpop.f32.mrf.mxu0 }
 0x262   : > { %v970_v45 = vadd.f32 %v1922_v62, %v969_v43  ;;  %v1006_v51 = vmax.f32 %v988_v47, 0.0 }
 0x264   : > { %v999_v46 = vmax.f32 %v970_v45, 0.0 }
 0x266   : > { %v1011_v48 = vpack.c.bf16 %v999_v46, %v998_v44 }
 0x267   : > { %v989_v49 = vpop.f32.mrf.mxu2 }
 0x268   : > { %v990_v50 = vadd.f32 %v1922_v62, %v989_v49  ;;  %1090 = vmatmul.bf16.gmra.mxu1 %v1011_v48 }
 0x26a   : > { %v1007_v52 = vmax.f32 %v990_v50, 0.0 }
 0x26c   : > { %v1015_v53 = vpack.c.bf16 %v1007_v52, %v1006_v51 }
 0x26e   : > { %1110 = vmatmul.bf16.gmra.mxu3 %v1015_v53 }
 0x2b5   : > { %v1076_v55 = vpop.f32.mrf.mxu1 }
 0x2b6   : > { %v1077_v56 = vadd.f32 %v1923_v54, %v1076_v55 }
 0x2b8   : > { %v2649_v57 = vmax.f32 %v1077_v56, 0.0 }
 0x2ba   : > { %v1132_v58 = vpack.c.bf16 %v2649_v57, %v2649_v57 }
 0x2bd   : > { %v1078_v59 = vpop.f32.mrf.mxu1 }
 0x2be   : > { %v1079_v60 = vadd.f32 %v1923_v54, %v1078_v59 }
 0x2c0   : > { %v2653_v61 = vmax.f32 %v1079_v60, 0.0 }
 0x2c1   : > { %v1096_v62 = vpop.f32.mrf.mxu3 }
 0x2c2   : > { %v1133_v63 = vpack.c.bf16 %v2653_v61, %v2653_v61  ;;  %v1097_v0 = vadd.f32 %v1923_v54, %v1096_v62 }
 0x2c4   : > { %v2657_v1 = vmax.f32 %v1097_v0, 0.0 }
 0x2c5   : > { %v1081_v2 = vpop.f32.mrf.mxu1 }
 0x2c6   : > { %v1140_v3 = vpack.c.bf16 %v2657_v1, %v2657_v1  ;;  %v1082_v4 = vadd.f32 %v1923_v54, %v1081_v2 }
 0x2c8   : > { %v2661_v5 = vmax.f32 %v1082_v4, 0.0 }
 0x2c9   : > { %v1098_v6 = vpop.f32.mrf.mxu3 }
 0x2ca   : > { %v1134_v7 = vpack.c.bf16 %v2661_v5, %v2661_v5  ;;  %v1099_v8 = vadd.f32 %v1923_v54, %v1098_v6 }
 0x2cc   : > { %v2665_v9 = vmax.f32 %v1099_v8, 0.0 }
 0x2cd   : > { %v1083_v10 = vpop.f32.mrf.mxu1 }
 0x2ce   : > { %v1141_v11 = vpack.c.bf16 %v2665_v9, %v2665_v9  ;;  %v1084_v12 = vadd.f32 %v1923_v54, %v1083_v10 }
 0x2d0   : > { %v2669_v13 = vmax.f32 %v1084_v12, 0.0 }
 0x2d1   : > { %v1101_v14 = vpop.f32.mrf.mxu3 }
 0x2d2   : > { %v1135_v15 = vpack.c.bf16 %v2669_v13, %v2669_v13  ;;  %v1102_v16 = vadd.f32 %v1923_v54, %v1101_v14 }
 0x2d4   : > { %v2673_v17 = vmax.f32 %v1102_v16, 0.0 }
 0x2d5   : > { %v1086_v18 = vpop.f32.mrf.mxu1 }
 0x2d6   : > { %v1142_v19 = vpack.c.bf16 %v2673_v17, %v2673_v17  ;;  %v1087_v20 = vadd.f32 %v1923_v54, %v1086_v18 }
 0x2d8   : > { %v2677_v21 = vmax.f32 %v1087_v20, 0.0 }
 0x2d9   : > { %v1103_v22 = vpop.f32.mrf.mxu3 }
 0x2da   : > { %v1136_v23 = vpack.c.bf16 %v2677_v21, %v2677_v21  ;;  %v1104_v24 = vadd.f32 %v1923_v54, %v1103_v22 }
 0x2dc   : > { %v2681_v25 = vmax.f32 %v1104_v24, 0.0 }
 0x2dd   : > { %v1088_v26 = vpop.f32.mrf.mxu1 }
 0x2de   : > { %v1143_v27 = vpack.c.bf16 %v2681_v25, %v2681_v25  ;;  %v1089_v28 = vadd.f32 %v1923_v54, %v1088_v26 }
 0x2e0   : > { %v2685_v29 = vmax.f32 %v1089_v28, 0.0 }
 0x2e1   : > { %v1106_v30 = vpop.f32.mrf.mxu3 }
 0x2e2   : > { %v1137_v31 = vpack.c.bf16 %v2685_v29, %v2685_v29  ;;  %v1107_v32 = vadd.f32 %v1923_v54, %v1106_v30 }
 0x2e4   : > { %v2689_v33 = vmax.f32 %v1107_v32, 0.0 }
 0x2e5   : > { %v1091_v34 = vpop.f32.mrf.mxu1 }
 0x2e6   : > { %v1144_v35 = vpack.c.bf16 %v2689_v33, %v2689_v33  ;;  %v1092_v36 = vadd.f32 %v1923_v54, %v1091_v34 }
 0x2e8   : > { %v2693_v37 = vmax.f32 %v1092_v36, 0.0 }
 0x2e9   : > { %v1108_v38 = vpop.f32.mrf.mxu3 }
 0x2ea   : > { %v1138_v39 = vpack.c.bf16 %v2693_v37, %v2693_v37  ;;  %v1109_v40 = vadd.f32 %v1923_v54, %v1108_v38 }
 0x2ec   : > { %v2697_v41 = vmax.f32 %v1109_v40, 0.0 }
 0x2ed   : > { %v1093_v42 = vpop.f32.mrf.mxu1 }
 0x2ee   : > { %v1145_v43 = vpack.c.bf16 %v2697_v41, %v2697_v41  ;;  %v1094_v44 = vadd.f32 %v1923_v54, %v1093_v42 }
 0x2f0   : > { %v2701_v45 = vmax.f32 %v1094_v44, 0.0 }
 0x2f1   : > { %v1111_v46 = vpop.f32.mrf.mxu3 }
 0x2f2   : > { %v1139_v47 = vpack.c.bf16 %v2701_v45, %v2701_v45  ;;  %v1112_v48 = vadd.f32 %v1923_v54, %v1111_v46 }
 0x2f4   : > { %v1130_v49 = vmax.f32 %v1112_v48, 0.0 }
 0x2f6   : > { %v1146_v50 = vpack.c.bf16 %v1130_v49, %v1130_v49 }
 0x2f9   : > { %v1113_v51 = vpop.f32.mrf.mxu3 }
 0x2fa   : > { %v1114_v52 = vadd.f32 %v1923_v54, %v1113_v51  ;;  %1151 = sbr.rel (%p1579_p9) target bundleno = 777 (0x309), region = 88 }
 0x2fc   : > { %v1131_v53 = vmax.f32 %v1114_v52, 0.0 }
 0x2fe   : > { %v1147_v55 = vpack.c.bf16 %v1131_v53, %v1131_v53 }
 0x2ff   : > { %v1619_v56 = vpack.c.bf16 %v2653_v61, %v2649_v57  ;;  %v1624_v59 = vpack.c.bf16 %v2669_v13, %v2661_v5  ;;  %v1629_v60 = vpack.c.bf16 %v2685_v29, %v2677_v21  ;;  %v1634_v54 = vpack.c.bf16 %v2701_v45, %v2693_v37 }
 0x300   : > { %v1639_v62 = vpack.c.bf16 %v2665_v9, %v2657_v1  ;;  %v1644_v0 = vpack.c.bf16 %v2681_v25, %v2673_v17  ;;  %v1649_v2 = vpack.c.bf16 %v2697_v41, %v2689_v33  ;;  %v1654_v4 = vpack.c.bf16 %v1131_v53, %v1130_v49 }
 0x301   : > { %1620 = vst [vmem:[%s1155_s4] sm:$0xff] %v1619_v56  }
 0x302   : > { %1696 = vst [vmem:[%s1155_s4 + $0x8] sm:$0xff] %v1624_v59  }
 0x303   : > { %1697 = vst [vmem:[%s1155_s4 + $0x10] sm:$0xff] %v1629_v60  }
 0x304   : > { %1698 = vst [vmem:[%s1155_s4 + $0x18] sm:$0xff] %v1634_v54  }
 0x305   : > { %1699 = vst [vmem:[%s1155_s4 + $0x20] sm:$0xff] %v1639_v62  }
 0x306   : > { %1700 = vst [vmem:[%s1155_s4 + $0x28] sm:$0xff] %v1644_v0  }
 0x307   : > { %1701 = vst [vmem:[%s1155_s4 + $0x30] sm:$0xff] %v1649_v2  }
 0x308   : > { %1702 = vst [vmem:[%s1155_s4 + $0x38] sm:$0xff] %v1654_v4  }
 0x309 PF: > { %p1581_p11 = scmp.ne.s32.totalorder %s2910_s22, 1 }
 0x30a   : > { %s1176_s21 = sshra.s32 (!%p1581_p11), %s1578_s2, 3 }
 0x30b   : > { %1175 = sbr.rel (%p1581_p11) target bundleno = 794 (0x31a), region = 92  ;;  %s1582_s6 = sshll.u32 (!%p1581_p11), %s1176_s21, 2 }
 0x30c   : > { %s1179_s24 = scalar_lea.vmem (!%p1581_p11), [#allocation4], %s1582_s6 }
 0x310   : > { %v1659_v6 = vpack.c.bf16 %v2653_v61, %v2649_v57  ;;  %v1664_v8 = vpack.c.bf16 %v2669_v13, %v2661_v5  ;;  %v1669_v10 = vpack.c.bf16 %v2685_v29, %v2677_v21  ;;  %v1674_v12 = vpack.c.bf16 %v2701_v45, %v2693_v37 }
 0x311   : > { %v1679_v14 = vpack.c.bf16 %v2665_v9, %v2657_v1  ;;  %v1684_v16 = vpack.c.bf16 %v2681_v25, %v2673_v17  ;;  %v1689_v18 = vpack.c.bf16 %v2697_v41, %v2689_v33  ;;  %v1694_v20 = vpack.c.bf16 %v1131_v53, %v1130_v49 }
 0x312   : > { %1660 = vst [vmem:[%s1179_s24] sm:$0xff] %v1659_v6  }
 0x313   : > { %1703 = vst [vmem:[%s1179_s24 + $0x8] sm:$0xff] %v1664_v8  }
 0x314   : > { %1704 = vst [vmem:[%s1179_s24 + $0x10] sm:$0xff] %v1669_v10  }
 0x315   : > { %1705 = vst [vmem:[%s1179_s24 + $0x18] sm:$0xff] %v1674_v12  }
 0x316   : > { %1706 = vst [vmem:[%s1179_s24 + $0x20] sm:$0xff] %v1679_v14  }
 0x317   : > { %1707 = vst [vmem:[%s1179_s24 + $0x28] sm:$0xff] %v1684_v16  }
 0x318   : > { %1708 = vst [vmem:[%s1179_s24 + $0x30] sm:$0xff] %v1689_v18  }
 0x319   : > { %1709 = vst [vmem:[%s1179_s24 + $0x38] sm:$0xff] %v1694_v20  }
 0x31a PF: > { %p1583_p10 = scmp.ne.s32.totalorder %s2246_s9, 4 }
 0x31b   : > { %s2878_s9 = sld [smem:[#allocation25_spill]] (!%p1583_p10) }
 0x31c   : > { %1199 = sbr.rel (%p1583_p10) target bundleno = 1239 (0x4d7), region = 96 }
 0x321   : > { %v1232_v22 = vunpack.c.l.b16 %v1146_v50  ;;  %v1233_v24 = vunpack.c.l.b16 %v1147_v55  ;;  %v1230_v26 = vunpack.c.l.b16 %v1144_v35  ;;  %v1231_v28 = vunpack.c.l.b16 %v1145_v43  ;;  %v1201_v5 = vld [vmem:[%s363_s3] sm:$0xf]  ;;  %p1584_p4 = scmp.ne.s32.totalorder %s2878_s9, 1 }
 0x322   : > { %v1228_v34 = vunpack.c.l.b16 %v1142_v19  ;;  %v1229_v36 = vunpack.c.l.b16 %v1143_v27  ;;  %v1226_v40 = vunpack.c.l.b16 %v1140_v3  ;;  %v1227_v33 = vunpack.c.l.b16 %v1141_v11 }
 0x323   : > { %v1241_v30 = vpack.c.b16 %v1233_v24, %v1232_v22  ;;  %v1240_v32 = vpack.c.b16 %v1231_v28, %v1230_v26  ;;  %v1224_v17 = vunpack.c.l.b16 %v1138_v39  ;;  %v1225_v19 = vunpack.c.l.b16 %v1139_v47 }
 0x324   : > { %v1239_v38 = vpack.c.b16 %v1229_v36, %v1228_v34  ;;  %v1238_v35 = vpack.c.b16 %v1227_v33, %v1226_v40  ;;  %v1222_v1 = vunpack.c.l.b16 %v1136_v23  ;;  %v1223_v3 = vunpack.c.l.b16 %v1137_v31 }
 0x325   : > { %1250 = vmatpush.bf16.msra.mxu0 %v1241_v30  ;;  %v1237_v25 = vpack.c.b16 %v1225_v19, %v1224_v17  ;;  %v1220_v11 = vunpack.c.l.b16 %v1134_v7  ;;  %v1221_v27 = vunpack.c.l.b16 %v1135_v15  ;;  %v1218_v21 = vunpack.c.l.b16 %v1132_v58  ;;  %v1200_v7 = vld [vmem:[#allocation3] sm:$0xff] }
 0x326   : > { %v1236_v9 = vpack.c.b16 %v1223_v3, %v1222_v1  ;;  %v1219_v23 = vunpack.c.l.b16 %v1133_v63 }
 0x327   : > { %v1235_v37 = vpack.c.b16 %v1221_v27, %v1220_v11 }
 0x328   : > { %v1234_v29 = vpack.c.b16 %v1219_v23, %v1218_v21 }
 0x329   : > { %1251 = vmatpush.bf16.msra.mxu0 %v1240_v32 }
 0x32d   : > { %1252 = vmatpush.bf16.msra.mxu0 %v1239_v38 }
 0x331   : > { %1253 = vmatpush.bf16.msra.mxu0 %v1238_v35 }
 0x335   : > { %1254 = vmatpush.bf16.msra.mxu0 %v1237_v25 }
 0x339   : > { %1255 = vmatpush.bf16.msra.mxu0 %v1236_v9 }
 0x33d   : > { %1256 = vmatpush.bf16.msra.mxu0 %v1235_v37 }
 0x341   : > { %1257 = vmatpush.bf16.msra.mxu0 %v1234_v29 }
 0x344   : > { %1258 = vmatmul.bf16.vlgmr.msra.gmra.mxu0 %v1201_v5 }
 0x3c1   : > { %v1259_v31 = vpop.f32.mrf.mxu0 }
 0x3c2   : > { %v1263_v13 = vadd.f32 %v1259_v31, %v1200_v7 }
 0x3c4   : > { %1264 = vst [vmem:[#allocation3] sm:$0xff] %v1263_v13 }
 0x3c5   : > { %1268 = sbr.rel (%p1584_p4) target bundleno = 1239 (0x4d7), region = 100 }
 0x3c9   : > { %v1261_v15 = vpop.f32.mrf.mxu0 }
 0x3ca   : > { %v1270_v57 = vlaneseq }
 0x3cb   : > { %v1269_v58 = vld [vmem:[#allocation3] sm:$0xff] }
 0x3cc   : > { %v1271_v39 = vand.u32 127, %v1270_v57 }
 0x3ce   : > { %vm1272_vm1 = vcmp.lt.s32.totalorder %v1271_v39, 8 }
 0x3cf   : > { %v1273_v61 = vsel %vm1272_vm1, %v1269_v58, -1e+30 }
 0x3d0   : > { %1274 = vmax.xlane.f32.xlu0 %v1273_v61 }
 0x443   : > { %v1275_v63 = vpop.xlane.xlu0 %1274 }
 0x444   : > { %v1276_v41 = vsub.f32 %v1273_v61, %v1275_v63 }
 0x446   : > { %v1277_v42 = vmul.f32 1.442695, %v1276_v41 }
 0x448   : > { %1924 = vpow2.f32 %v1277_v42 }
 0x44e   : > { %v1925_v43 = vpop.eup %1924 }
 0x44f   : > { %1279 = vadd.xlane.f32.xlu0 %v1925_v43 }
 0x4c2   : > { %v1280_v44 = vpop.xlane.xlu0 %1279 }
 0x4c3   : > { %1926 = vrcp.f32 %v1280_v44  ;;  %v1292_v48 = vand.u32 2147483648, %v1280_v44  ;;  %v1290_v50 = vand.u32 2147483647, %v1280_v44  ;;  %vm1286_vm3 = vweird.f32 %v1280_v44 }
 0x4c5   : > { %v1293_v52 = vor.u32 1.1754944e-38, %v1292_v48  ;;  %vm1291_vm5 = vcmp.eq.f32.partialorder %v1290_v50, 8.507059e+37 }
 0x4c9   : > { %v1927_v45 = vpop.eup %1926 }
 0x4ca   : > { %v1282_v46 = vmul.f32 %v1927_v45, %v1280_v44  ;;  %vm1287_vm2 = vweird.f32 %v1927_v45 }
 0x4cb   : > { %vm1288_vm4 = vmor %vm1286_vm3, %vm1287_vm2 }
 0x4cc   : > { %v1283_v47 = vsub.f32 1.0, %v1282_v46 }
 0x4ce   : > { %v1284_v49 = vmul.f32 %v1927_v45, %v1283_v47 }
 0x4d0   : > { %v1285_v51 = vadd.f32 %v1927_v45, %v1284_v49 }
 0x4d2   : > { %v1289_v53 = vsel %vm1288_vm4, %v1927_v45, %v1285_v51 }
 0x4d3   : > { %v1294_v55 = vsel %vm1291_vm5, %v1293_v52, %v1289_v53 }
 0x4d4   : > { %v1295_v56 = vmul.f32 %v1925_v43, %v1294_v55 }
 0x4d6   : > { %1296 = vst [vmem:[#allocation17] sm:$0xff] %v1295_v56 }
 0x4d7 PF: > { %p1803_p5 = scmp.eq.s32.totalorder %s2381_s14, 19  ;;  %s2879_s22 = sld [smem:[#allocation34_spill]] }
 0x4d8   : > { %s2276_s20 = smov [#allocation17]  }
 0x4d9   : > { %s1303_s2 = sshll.u32 %s2276_s20, 4  ;;  %s1304_s2 = int_to_ptr.vmem [resolvable:$true] %s1303_s2 }
 0x4dd   : > { %s1305_s30 = sshll.u32 %s2879_s22, 4  ;;  %s1306_s30 = int_to_ptr.hbm [resolvable:$true] %s1305_s30 }
 0x4de   : > { %1771 = dma.vmem_to_hbm [thread:$0]  (%p1803_p5), %s1304_s2, 128, %s1306_s30, [#allocation8]  }
 0x4df   : > { %2209 = dma.done.wait (%p1803_p5), [#allocation8], 128  }
 0x4e0   : > { %2211 = vsyncadd (%p1803_p5), [#allocation8], 4294967168 }
 0x4e1 PF: > { %s26_s13 = sadd.s32 1, %s2262_s13   ;;  %s2881_s14 = sld [smem:[#allocation26_spill]] }
 0x4e2   : > { %p2787_p12 = scmp.ge.s32.totalorder %s26_s13, 22   ;;  %s2882_s19 = sld [smem:[#allocation27_spill]] }
 0x4e3   : > { %s2883_s15 = sld [smem:[#allocation28_spill]]  ;;  %s2885_s24 = smov %s2218_s25 }
 0x4e4   : > { %s2886_s25 = smov %s2222_s26  ;;  %s2887_s26 = smov %s2481_s17 }
 0x4e5   : > { %s2888_s27 = smov %s2230_s28  ;;  %s2889_s28 = smov %s2234_s29 }
 0x4e6   : > { %s2890_s29 = smov %s2462_s7  ;;  %s2891_s30 = smov %s2250_s10 }
 0x4e7   : > { %s2892_s8 = smov %s2254_s11  ;;  %s2893_s9 = smov %s2258_s12 }
 0x4e8   : > { %s2894_s10 = smov %s2881_s14  ;;  %s2895_s11 = smov %s2882_s19 }
 0x4e9   : > { %s2896_s12 = smov %s2883_s15  ;;  %25 = sbr.rel (!%p2787_p12) target bundleno = 20 (0x14), region = 150 }
 0x4ee   :  { %1319 = vsyncpa [#allocation7], 1 }
 0x4ef   :  { %1321 = vsyncpa [#allocation7 + $0x1], 1 }
 0x4f0   :  { %1322 = vsyncpa [#allocation10], 1 }
 0x4f1   :  { %1324 = vsyncpa [#allocation10 + $0x1], 1 }
 0x4f2   :  { %1325 = vsyncpa [#allocation13], 1 }
 0x4f3   :  { %1326 = vsyncpa [#allocation16], 1 }
 0x4f4   :  { %1327 = vsyncpa [#allocation8], 1 }
 0x4f5   :  { %1329 = vsyncpa [#allocation8 + $0x1], 1 }

</bundles_post_ra>
